<compile_context>
chip_gen: v7x
topology: tpu7x:2x2x1
jax: 0.10.0
libtpu: 0.0.40
codegen_flags: <defaults>
</compile_context>

<pallas_src>
import functools

import numpy as np
import jax
import jax.numpy as jnp
from jax.experimental import pallas as pl
from jax.experimental.pallas import tpu as pltpu


# ---------------------------------------------------------------------------
# Fused Pallas kernel: the entire ResNetUpBlock forward for one batch element.
# ---------------------------------------------------------------------------
def fused_resnet_up_block_kernel(
        x_ref, br_ref, interp_ref,
        up_wf_ref, up_s_ref, up_b_ref,
        c1_wf_ref, c1_wb_ref, c1_s_ref, c1_b_ref,
        c2_wf_ref, c2_s_ref, c2_b_ref,
        c3_wf_ref, c3_s_ref, c3_b_ref,
        ds_wu_ref, ds_wb_ref, ds_s_ref, ds_b_ref,
        o_ref):
    f32 = jnp.float32
    L_up = o_ref.shape[1]

    def pad_rows(a, p):
        # zero-pad p rows (sublanes) on each side, entirely in VMEM/vregs
        z = jnp.zeros((p, a.shape[1]), a.dtype)
        return jnp.concatenate([z, a, z], axis=0)

    def im2col(a, K, p):
        # (L, C) -> (L_out, K*C): K shifted slices concatenated along lanes so
        # each conv becomes ONE matmul with a K*C contraction (single MXU push).
        ap = pad_rows(a, p) if p > 0 else a
        L_out = a.shape[0] + 2 * p - K + 1
        return jnp.concatenate([ap[k:k + L_out, :] for k in range(K)], axis=1)

    def leaky(v, slope):
        return jnp.where(v >= 0, v, slope * v)

    x = x_ref[0]                                                  # (L_x, C_in)

    # ---- self.up: ConvTranspose1d(k=2, s=1) + folded BN + ReLU --------------
    # (transpose conv expressed as correlation with pad = K-1 = 1)
    up = jnp.dot(im2col(x, 2, 1), up_wf_ref[...],
                 preferred_element_type=f32)                      # (L_up, C_out)
    up = jnp.maximum(up * up_s_ref[...] + up_b_ref[...], 0.0)

    # ---- bridge: nearest interpolation to L_up via static one-hot weights ---
    # interp_ref: (L_up, L_b) one-hot, br_ref[0]: (1, L_b)  ->  b_up: (L_up, 1)
    b_up = jnp.sum(interp_ref[...] * br_ref[0], axis=1, keepdims=True)
    b_pad = pad_rows(b_up, 2)                                     # halo for k=5

    # ---- conv1 (k5, p2) over concat([up, repeat(bridge)]) -------------------
    # up part: one MXU matmul; bridge part (repeated identical channels,
    # weights pre-summed): rank-1 broadcast MACs on the VPU.
    y = jnp.dot(im2col(up, 5, 2), c1_wf_ref[...], preferred_element_type=f32)
    for k in range(5):
        y = y + b_pad[k:k + L_up, :] * c1_wb_ref[k:k + 1, :]
    y = leaky(y * c1_s_ref[...] + c1_b_ref[...], 0.2)

    # ---- conv2 (k5, p2) ------------------------------------------------------
    y = jnp.dot(im2col(y, 5, 2), c2_wf_ref[...], preferred_element_type=f32)
    y = leaky(y * c2_s_ref[...] + c2_b_ref[...], 0.2)

    # ---- conv3 (k3, p1) ------------------------------------------------------
    y = jnp.dot(im2col(y, 3, 1), c3_wf_ref[...], preferred_element_type=f32)
    y = leaky(y * c3_s_ref[...] + c3_b_ref[...], 0.2)

    # ---- downsample residual: 1x1 conv (no bias) + BN, split weights --------
    res = jnp.dot(up, ds_wu_ref[...], preferred_element_type=f32)
    res = res + b_up * ds_wb_ref[...]                 # bridge part: rank-1 VPU
    res = res * ds_s_ref[...] + ds_b_ref[...]
    # adaptive_avg_pool1d(res, len(y)) == identity: all convs preserve length.

    # ---- fused residual add + final LeakyReLU(0.01) epilogue ----------------
    o_ref[0] = leaky(y + res, 0.01).astype(o_ref.dtype)


# ---------------------------------------------------------------------------
# Wrapper: one pallas_call over the batch, weights resident in VMEM.
# ---------------------------------------------------------------------------
def resnet_up_block_forward(x, bridge_ncl, fp):
    """x: (N, L, C_in) channels-last; bridge_ncl: (N, 1, L_b) torch NCL."""
    N, L_x, C_in = x.shape
    L_b = bridge_ncl.shape[2]
    C_out = fp['up_wf'].shape[1]
    K_up = fp['up_wf'].shape[0] // C_in
    L_up = L_x + K_up - 1                       # ConvTranspose1d(k=2,s=1): L + 1

    # Static one-hot nearest-interpolation matrix (torch 'nearest' indexing).
    idx = (np.arange(L_up) * L_b) // L_up
    interp = np.zeros((L_up, L_b), np.float32)
    interp[np.arange(L_up), idx] = 1.0
    interp = jnp.asarray(interp)

    batch3d = lambda shape: pl.BlockSpec(shape, lambda n: (n, 0, 0))
    resident = lambda arr: pl.BlockSpec(arr.shape, lambda n: (0, 0))

    in_specs = [
        batch3d((1, L_x, C_in)),                 # x
        batch3d((1, 1, L_b)),                    # bridge
        pl.BlockSpec((L_up, L_b), lambda n: (0, 0)),   # interp (one-hot)
        resident(fp['up_wf']), resident(fp['up_scale']), resident(fp['up_bias']),
        resident(fp['c1_wf']), resident(fp['c1_wb']),
        resident(fp['c1_scale']), resident(fp['c1_bias']),
        resident(fp['c2_wf']), resident(fp['c2_scale']), resident(fp['c2_bias']),
        resident(fp['c3_wf']), resident(fp['c3_scale']), resident(fp['c3_bias']),
        resident(fp['ds_wu']), resident(fp['ds_wb']),
        resident(fp['ds_scale']), resident(fp['ds_bias']),
    ]

    return pl.pallas_call(
        fused_resnet_up_block_kernel,
        out_shape=jax.ShapeDtypeStruct((N, L_up, C_out), x.dtype),
        grid=(N,),
        in_specs=in_specs,
        out_specs=pl.BlockSpec((1, L_up, C_out), lambda n: (n, 0, 0)),
        compiler_params=pltpu.CompilerParams(
            dimension_semantics=("parallel",),   # v7x: batch across both TCs
        ),
    )(x, bridge_ncl, interp,
      fp['up_wf'], fp['up_scale'], fp['up_bias'],
      fp['c1_wf'], fp['c1_wb'], fp['c1_scale'], fp['c1_bias'],
      fp['c2_wf'], fp['c2_scale'], fp['c2_bias'],
      fp['c3_wf'], fp['c3_scale'], fp['c3_bias'],
      fp['ds_wu'], fp['ds_wb'], fp['ds_scale'], fp['ds_bias'])


# ---------------------------------------------------------------------------
# Parameter construction (deterministic, synthetic; eval-mode BN folded)
# ---------------------------------------------------------------------------
def _fold_bn(k_gamma, k_beta, c_out, conv_bias, eps=1e-5):
    gamma = 1.0 + 0.1 * jax.random.normal(k_gamma, (c_out,), jnp.float32)
    beta = 0.1 * jax.random.normal(k_beta, (c_out,), jnp.float32)
    running_mean = jnp.zeros((c_out,), jnp.float32)
    running_var = jnp.ones((c_out,), jnp.float32)
    s = gamma / jnp.sqrt(running_var + eps)
    b = (conv_bias - running_mean) * s + beta
    return s.reshape(1, c_out), b.reshape(1, c_out)


def init_params(key, in_channels, out_channels):
    rep = out_channels // 8
    blk_in = out_channels + rep              # bridge has 1 channel -> concat width
    ks = jax.random.split(key, 20)
    p = {}

    def w(k, K, cin, cout):
        return 0.1 * jax.random.normal(k, (K, cin, cout), jnp.float32)

    def bvec(k, cout):
        return 0.1 * jax.random.normal(k, (cout,), jnp.float32)

    # up: ConvTranspose1d(in, out, k=2, s=1) expressed as a correlation with
    # pad K-1 = 1; synthetic weights are generated directly in that
    # parameterization.  To load real torch weights W_t (C_in, C_out, K):
    #   p['up_w'][k, ci, co] = W_t[ci, co, K - 1 - k]
    p['up_w'] = w(ks[0], 2, in_channels, out_channels)
    p['up_scale'], p['up_bias'] = _fold_bn(ks[1], ks[2], out_channels, bvec(ks[3], out_channels))

    # conv_block.convos
    p['c1_w'] = w(ks[4], 5, blk_in, 2 * out_channels)
    p['c1_scale'], p['c1_bias'] = _fold_bn(ks[5], ks[6], 2 * out_channels, bvec(ks[7], 2 * out_channels))
    p['c2_w'] = w(ks[8], 5, 2 * out_channels, 2 * out_channels)
    p['c2_scale'], p['c2_bias'] = _fold_bn(ks[9], ks[10], 2 * out_channels, bvec(ks[11], 2 * out_channels))
    p['c3_w'] = w(ks[12], 3, 2 * out_channels, out_channels)
    p['c3_scale'], p['c3_bias'] = _fold_bn(ks[13], ks[14], out_channels, bvec(ks[15], out_channels))

    # downsample: Conv1d(blk_in, out, k=1, bias=False) + BN
    p['ds_w'] = w(ks[16], 1, blk_in, out_channels)
    p['ds_scale'], p['ds_bias'] = _fold_bn(ks[17], ks[18], out_channels,
                                           jnp.zeros((out_channels,), jnp.float32))
    return p


def prepare_fused_params(p, out_channels):
    """Flatten weights for im2col matmuls and split the concat channels:
    'up' part -> (K*C_up, C_out) matmul weights, bridge part (repeated
    identical channels) -> pre-summed (K, C_out) rank-1 weights."""
    fp = dict(p)
    fp['up_wf'] = p['up_w'].reshape(-1, p['up_w'].shape[-1])                       # (2*C_in, C_out)
    fp['c1_wf'] = p['c1_w'][:, :out_channels, :].reshape(-1, p['c1_w'].shape[-1])  # (5*C_out, 2C_out)
    fp['c1_wb'] = p['c1_w'][:, out_channels:, :].sum(axis=1)                       # (5, 2C_out)
    fp['c2_wf'] = p['c2_w'].reshape(-1, p['c2_w'].shape[-1])                       # (5*2C_out, 2C_out)
    fp['c3_wf'] = p['c3_w'].reshape(-1, p['c3_w'].shape[-1])                       # (3*2C_out, C_out)
    fp['ds_wu'] = p['ds_w'][0, :out_channels, :]                                   # (C_out, C_out)
    fp['ds_wb'] = p['ds_w'][0, out_channels:, :].sum(axis=0, keepdims=True)        # (1, C_out)
    return fp


# ---------------------------------------------------------------------------
# Pure-JAX reference (straightforward cat-based math) for a correctness check.
# ---------------------------------------------------------------------------
def reference_forward(x, bridge_ncl, p, *, out_channels):
    hi = jax.lax.Precision.HIGHEST

    def conv(a, w, pad):                      # a: (N,L,C), w: (K,C,C_out)
        K = w.shape[0]
        ap = jnp.pad(a, ((0, 0), (pad, pad), (0, 0)))
        L_out = a.shape[1] + 2 * pad - K + 1
        acc = jnp.zeros((a.shape[0], L_out, w.shape[2]), jnp.float32)
        for k in range(K):
            acc = acc + jnp.einsum('nlc,co->nlo', ap[:, k:k + L_out, :], w[k], precision=hi)
        return acc

    def leaky(v, s):
        return jnp.where(v >= 0, v, s * v)

    up = jnp.maximum(conv(x, p['up_w'], 1) * p['up_scale'] + p['up_bias'], 0.0)
    L_up, L_b = up.shape[1], bridge_ncl.shape[2]
    idx = (jnp.arange(L_up) * L_b) // L_up
    b = bridge_ncl[:, 0, :][:, idx][:, :, None]
    b = jnp.tile(b, (1, 1, out_channels // 8))
    cat = jnp.concatenate([up, b], axis=-1)

    y = leaky(conv(cat, p['c1_w'], 2) * p['c1_scale'] + p['c1_bias'], 0.2)
    y = leaky(conv(y, p['c2_w'], 2) * p['c2_scale'] + p['c2_bias'], 0.2)
    y = leaky(conv(y, p['c3_w'], 1) * p['c3_scale'] + p['c3_bias'], 0.2)
    res = conv(cat, p['ds_w'], 0) * p['ds_scale'] + p['ds_bias']
    return leaky(y + res, 0.01)


# ---------------------------------------------------------------------------
if __name__ == "__main__":
    key = jax.random.PRNGKey(0)
    k_x, k_b, k_p = jax.random.split(key, 3)

    N = 2
    in_channels = 8
    out_channels = 16          # repeat factor 2 -> conv_block input = 16 + 2 = 18
    L_x = 16
    L_bridge = 8

    # x channels-last (torch NCL (2,8,16) -> NLC); bridge in torch NCL (2,1,8).
    x = jax.random.normal(k_x, (N, L_x, in_channels), jnp.float32)
    bridge = jax.random.normal(k_b, (N, 1, L_bridge), jnp.float32)
    params = init_params(k_p, in_channels, out_channels)
    fused_params = prepare_fused_params(params, out_channels)

    fwd = jax.jit(resnet_up_block_forward)
    out = fwd(x, bridge, fused_params)
    jax.block_until_ready(out)

    # ConvTranspose1d(k=2, s=1) lengthens by 1; all other convs preserve length.
    assert out.shape == (N, L_x + 1, out_channels), out.shape
    assert bool(jnp.all(jnp.isfinite(out)))

    ref = reference_forward(x, bridge, params, out_channels=out_channels)
    err = float(jnp.max(jnp.abs(out - ref)))
    assert err < 2e-2, f"max abs err vs reference: {err}"

    print("KERNEL_OK")
</pallas_src>

<mosaic_0001>
module attributes {stable_mosaic.version = 11 : i64} {
  func.func @fused_resnet_up_block_kernel(%arg0: i32, %arg1: memref<1x16x8xf32, #tpu.memory_space<vmem>>, %arg2: memref<1x1x8xf32, #tpu.memory_space<vmem>>, %arg3: memref<17x8xf32, #tpu.memory_space<vmem>>, %arg4: memref<16x16xf32, #tpu.memory_space<vmem>>, %arg5: memref<1x16xf32, #tpu.memory_space<vmem>>, %arg6: memref<1x16xf32, #tpu.memory_space<vmem>>, %arg7: memref<80x32xf32, #tpu.memory_space<vmem>>, %arg8: memref<5x32xf32, #tpu.memory_space<vmem>>, %arg9: memref<1x32xf32, #tpu.memory_space<vmem>>, %arg10: memref<1x32xf32, #tpu.memory_space<vmem>>, %arg11: memref<160x32xf32, #tpu.memory_space<vmem>>, %arg12: memref<1x32xf32, #tpu.memory_space<vmem>>, %arg13: memref<1x32xf32, #tpu.memory_space<vmem>>, %arg14: memref<96x16xf32, #tpu.memory_space<vmem>>, %arg15: memref<1x16xf32, #tpu.memory_space<vmem>>, %arg16: memref<1x16xf32, #tpu.memory_space<vmem>>, %arg17: memref<16x16xf32, #tpu.memory_space<vmem>>, %arg18: memref<1x16xf32, #tpu.memory_space<vmem>>, %arg19: memref<1x16xf32, #tpu.memory_space<vmem>>, %arg20: memref<1x16xf32, #tpu.memory_space<vmem>>, %arg21: memref<1x17x16xf32, #tpu.memory_space<vmem>>) attributes {dimension_semantics = [#tpu.dimension_semantics<parallel>], iteration_bounds = array<i64: 2>, scalar_prefetch = 0 : i64, scratch_operands = 0 : i64, tpu.core_type = #tpu.core_type<tc>, window_params = [{transform_indices = @transform_0, window_bounds = array<i64: 1, 16, 8>}, {transform_indices = @transform_1, window_bounds = array<i64: 1, 1, 8>}, {pipeline_mode = #tpu.pipeline_mode<synchronous>, transform_indices = @transform_2, window_bounds = array<i64: 17, 8>}, {pipeline_mode = #tpu.pipeline_mode<synchronous>, transform_indices = @transform_3, window_bounds = array<i64: 16, 16>}, {pipeline_mode = #tpu.pipeline_mode<synchronous>, transform_indices = @transform_4, window_bounds = array<i64: 1, 16>}, {pipeline_mode = #tpu.pipeline_mode<synchronous>, transform_indices = @transform_5, window_bounds = array<i64: 1, 16>}, {pipeline_mode = #tpu.pipeline_mode<synchronous>, transform_indices = @transform_6, window_bounds = array<i64: 80, 32>}, {pipeline_mode = #tpu.pipeline_mode<synchronous>, transform_indices = @transform_7, window_bounds = array<i64: 5, 32>}, {pipeline_mode = #tpu.pipeline_mode<synchronous>, transform_indices = @transform_8, window_bounds = array<i64: 1, 32>}, {pipeline_mode = #tpu.pipeline_mode<synchronous>, transform_indices = @transform_9, window_bounds = array<i64: 1, 32>}, {pipeline_mode = #tpu.pipeline_mode<synchronous>, transform_indices = @transform_10, window_bounds = array<i64: 160, 32>}, {pipeline_mode = #tpu.pipeline_mode<synchronous>, transform_indices = @transform_11, window_bounds = array<i64: 1, 32>}, {pipeline_mode = #tpu.pipeline_mode<synchronous>, transform_indices = @transform_12, window_bounds = array<i64: 1, 32>}, {pipeline_mode = #tpu.pipeline_mode<synchronous>, transform_indices = @transform_13, window_bounds = array<i64: 96, 16>}, {pipeline_mode = #tpu.pipeline_mode<synchronous>, transform_indices = @transform_14, window_bounds = array<i64: 1, 16>}, {pipeline_mode = #tpu.pipeline_mode<synchronous>, transform_indices = @transform_15, window_bounds = array<i64: 1, 16>}, {pipeline_mode = #tpu.pipeline_mode<synchronous>, transform_indices = @transform_16, window_bounds = array<i64: 16, 16>}, {pipeline_mode = #tpu.pipeline_mode<synchronous>, transform_indices = @transform_17, window_bounds = array<i64: 1, 16>}, {pipeline_mode = #tpu.pipeline_mode<synchronous>, transform_indices = @transform_18, window_bounds = array<i64: 1, 16>}, {pipeline_mode = #tpu.pipeline_mode<synchronous>, transform_indices = @transform_19, window_bounds = array<i64: 1, 16>}, {transform_indices = @transform_20, window_bounds = array<i64: 1, 17, 16>}]} {
    %c0 = arith.constant 0 : index
    %c0_0 = arith.constant 0 : index
    %c0_1 = arith.constant 0 : index
    %0 = vector.load %arg1[%c0, %c0_0, %c0_1] : memref<1x16x8xf32, #tpu.memory_space<vmem>>, vector<1x16x8xf32>
    %1 = vector.shape_cast %0 : vector<1x16x8xf32> to vector<16x8xf32>
    %cst = arith.constant 0.000000e+00 : f32
    %2 = vector.broadcast %cst : f32 to vector<1x8xf32>
    %3 = tpu.concatenate %2, %1, %2 in 0 : vector<1x8xf32>, vector<16x8xf32>, vector<1x8xf32> -> vector<18x8xf32>
    %4 = vector.extract_strided_slice %3 {offsets = [0, 0], sizes = [17, 8], strides = [1, 1]} : vector<18x8xf32> to vector<17x8xf32>
    %5 = vector.extract_strided_slice %3 {offsets = [1, 0], sizes = [17, 8], strides = [1, 1]} : vector<18x8xf32> to vector<17x8xf32>
    %6 = tpu.concatenate %4, %5 in 1 : vector<17x8xf32>, vector<17x8xf32> -> vector<17x16xf32>
    %c0_2 = arith.constant 0 : index
    %c0_3 = arith.constant 0 : index
    %7 = vector.load %arg4[%c0_2, %c0_3] : memref<16x16xf32, #tpu.memory_space<vmem>>, vector<16x16xf32>
    %cst_4 = arith.constant dense<0.000000e+00> : vector<17x16xf32>
    %8 = tpu.matmul %6, %7, %cst_4 {dimension_numbers = #tpu.dot_dimension_numbers<[1], [0], [0], [1], [0, 0, 1, 1], [], []>} : vector<17x16xf32>, vector<16x16xf32>, vector<17x16xf32> -> vector<17x16xf32>
    %c0_5 = arith.constant 0 : index
    %c0_6 = arith.constant 0 : index
    %9 = vector.load %arg5[%c0_5, %c0_6] : memref<1x16xf32, #tpu.memory_space<vmem>>, vector<1x16xf32>
    %10 = vector.broadcast %9 : vector<1x16xf32> to vector<17x16xf32>
    %11 = arith.mulf %8, %10 : vector<17x16xf32>
    %c0_7 = arith.constant 0 : index
    %c0_8 = arith.constant 0 : index
    %12 = vector.load %arg6[%c0_7, %c0_8] : memref<1x16xf32, #tpu.memory_space<vmem>>, vector<1x16xf32>
    %13 = vector.broadcast %12 : vector<1x16xf32> to vector<17x16xf32>
    %14 = arith.addf %11, %13 : vector<17x16xf32>
    %cst_9 = arith.constant 0.000000e+00 : f32
    %15 = vector.broadcast %cst_9 : f32 to vector<17x16xf32>
    %16 = arith.maximumf %14, %15 : vector<17x16xf32>
    %c0_10 = arith.constant 0 : index
    %c0_11 = arith.constant 0 : index
    %17 = vector.load %arg3[%c0_10, %c0_11] : memref<17x8xf32, #tpu.memory_space<vmem>>, vector<17x8xf32>
    %c0_12 = arith.constant 0 : index
    %c0_13 = arith.constant 0 : index
    %c0_14 = arith.constant 0 : index
    %18 = vector.load %arg2[%c0_12, %c0_13, %c0_14] : memref<1x1x8xf32, #tpu.memory_space<vmem>>, vector<1x1x8xf32>
    %19 = vector.shape_cast %18 : vector<1x1x8xf32> to vector<1x8xf32>
    %20 = vector.broadcast %19 : vector<1x8xf32> to vector<17x8xf32>
    %21 = arith.mulf %17, %20 : vector<17x8xf32>
    %cst_15 = arith.constant dense<0.000000e+00> : vector<17xf32>
    %22 = vector.multi_reduction <add>, %21, %cst_15 [1] : vector<17x8xf32> to vector<17xf32>
    %23 = vector.shape_cast %22 : vector<17xf32> to vector<17x1xf32>
    %cst_16 = arith.constant 0.000000e+00 : f32
    %24 = vector.broadcast %cst_16 : f32 to vector<2x1xf32>
    %25 = tpu.concatenate %24, %23, %24 in 0 : vector<2x1xf32>, vector<17x1xf32>, vector<2x1xf32> -> vector<21x1xf32>
    %cst_17 = arith.constant 0.000000e+00 : f32
    %26 = vector.broadcast %cst_17 : f32 to vector<2x16xf32>
    %27 = tpu.concatenate %26, %16, %26 in 0 : vector<2x16xf32>, vector<17x16xf32>, vector<2x16xf32> -> vector<21x16xf32>
    %28 = vector.extract_strided_slice %27 {offsets = [0, 0], sizes = [17, 16], strides = [1, 1]} : vector<21x16xf32> to vector<17x16xf32>
    %29 = vector.extract_strided_slice %27 {offsets = [1, 0], sizes = [17, 16], strides = [1, 1]} : vector<21x16xf32> to vector<17x16xf32>
    %30 = vector.extract_strided_slice %27 {offsets = [2, 0], sizes = [17, 16], strides = [1, 1]} : vector<21x16xf32> to vector<17x16xf32>
    %31 = vector.extract_strided_slice %27 {offsets = [3, 0], sizes = [17, 16], strides = [1, 1]} : vector<21x16xf32> to vector<17x16xf32>
    %32 = vector.extract_strided_slice %27 {offsets = [4, 0], sizes = [17, 16], strides = [1, 1]} : vector<21x16xf32> to vector<17x16xf32>
    %33 = tpu.concatenate %28, %29, %30, %31, %32 in 1 : vector<17x16xf32>, vector<17x16xf32>, vector<17x16xf32>, vector<17x16xf32>, vector<17x16xf32> -> vector<17x80xf32>
    %c0_18 = arith.constant 0 : index
    %c0_19 = arith.constant 0 : index
    %34 = vector.load %arg7[%c0_18, %c0_19] : memref<80x32xf32, #tpu.memory_space<vmem>>, vector<80x32xf32>
    %cst_20 = arith.constant dense<0.000000e+00> : vector<17x32xf32>
    %35 = tpu.matmul %33, %34, %cst_20 {dimension_numbers = #tpu.dot_dimension_numbers<[1], [0], [0], [1], [0, 0, 1, 1], [], []>} : vector<17x80xf32>, vector<80x32xf32>, vector<17x32xf32> -> vector<17x32xf32>
    %36 = vector.extract_strided_slice %25 {offsets = [0, 0], sizes = [17, 1], strides = [1, 1]} : vector<21x1xf32> to vector<17x1xf32>
    %c0_21 = arith.constant 0 : index
    %c0_22 = arith.constant 0 : index
    %37 = vector.load %arg8[%c0_21, %c0_22] : memref<5x32xf32, #tpu.memory_space<vmem>>, vector<1x32xf32>
    %38 = vector.broadcast %36 : vector<17x1xf32> to vector<17x32xf32>
    %39 = vector.broadcast %37 : vector<1x32xf32> to vector<17x32xf32>
    %40 = arith.mulf %38, %39 : vector<17x32xf32>
    %41 = arith.addf %35, %40 : vector<17x32xf32>
    %42 = vector.extract_strided_slice %25 {offsets = [1, 0], sizes = [17, 1], strides = [1, 1]} : vector<21x1xf32> to vector<17x1xf32>
    %c1 = arith.constant 1 : index
    %c0_23 = arith.constant 0 : index
    %43 = vector.load %arg8[%c1, %c0_23] : memref<5x32xf32, #tpu.memory_space<vmem>>, vector<1x32xf32>
    %44 = vector.broadcast %42 : vector<17x1xf32> to vector<17x32xf32>
    %45 = vector.broadcast %43 : vector<1x32xf32> to vector<17x32xf32>
    %46 = arith.mulf %44, %45 : vector<17x32xf32>
    %47 = arith.addf %41, %46 : vector<17x32xf32>
    %48 = vector.extract_strided_slice %25 {offsets = [2, 0], sizes = [17, 1], strides = [1, 1]} : vector<21x1xf32> to vector<17x1xf32>
    %c2 = arith.constant 2 : index
    %c0_24 = arith.constant 0 : index
    %49 = vector.load %arg8[%c2, %c0_24] : memref<5x32xf32, #tpu.memory_space<vmem>>, vector<1x32xf32>
    %50 = vector.broadcast %48 : vector<17x1xf32> to vector<17x32xf32>
    %51 = vector.broadcast %49 : vector<1x32xf32> to vector<17x32xf32>
    %52 = arith.mulf %50, %51 : vector<17x32xf32>
    %53 = arith.addf %47, %52 : vector<17x32xf32>
    %54 = vector.extract_strided_slice %25 {offsets = [3, 0], sizes = [17, 1], strides = [1, 1]} : vector<21x1xf32> to vector<17x1xf32>
    %c3 = arith.constant 3 : index
    %c0_25 = arith.constant 0 : index
    %55 = vector.load %arg8[%c3, %c0_25] : memref<5x32xf32, #tpu.memory_space<vmem>>, vector<1x32xf32>
    %56 = vector.broadcast %54 : vector<17x1xf32> to vector<17x32xf32>
    %57 = vector.broadcast %55 : vector<1x32xf32> to vector<17x32xf32>
    %58 = arith.mulf %56, %57 : vector<17x32xf32>
    %59 = arith.addf %53, %58 : vector<17x32xf32>
    %60 = vector.extract_strided_slice %25 {offsets = [4, 0], sizes = [17, 1], strides = [1, 1]} : vector<21x1xf32> to vector<17x1xf32>
    %c4 = arith.constant 4 : index
    %c0_26 = arith.constant 0 : index
    %61 = vector.load %arg8[%c4, %c0_26] : memref<5x32xf32, #tpu.memory_space<vmem>>, vector<1x32xf32>
    %62 = vector.broadcast %60 : vector<17x1xf32> to vector<17x32xf32>
    %63 = vector.broadcast %61 : vector<1x32xf32> to vector<17x32xf32>
    %64 = arith.mulf %62, %63 : vector<17x32xf32>
    %65 = arith.addf %59, %64 : vector<17x32xf32>
    %c0_27 = arith.constant 0 : index
    %c0_28 = arith.constant 0 : index
    %66 = vector.load %arg9[%c0_27, %c0_28] : memref<1x32xf32, #tpu.memory_space<vmem>>, vector<1x32xf32>
    %67 = vector.broadcast %66 : vector<1x32xf32> to vector<17x32xf32>
    %68 = arith.mulf %65, %67 : vector<17x32xf32>
    %c0_29 = arith.constant 0 : index
    %c0_30 = arith.constant 0 : index
    %69 = vector.load %arg10[%c0_29, %c0_30] : memref<1x32xf32, #tpu.memory_space<vmem>>, vector<1x32xf32>
    %70 = vector.broadcast %69 : vector<1x32xf32> to vector<17x32xf32>
    %71 = arith.addf %68, %70 : vector<17x32xf32>
    %cst_31 = arith.constant 0.000000e+00 : f32
    %72 = vector.broadcast %cst_31 : f32 to vector<17x32xf32>
    %73 = arith.cmpf oge, %71, %72 : vector<17x32xf32>
    %cst_32 = arith.constant 2.000000e-01 : f32
    %74 = vector.broadcast %cst_32 : f32 to vector<17x32xf32>
    %75 = arith.mulf %74, %71 : vector<17x32xf32>
    %76 = arith.select %73, %71, %75 : vector<17x32xi1>, vector<17x32xf32>
    %cst_33 = arith.constant 0.000000e+00 : f32
    %77 = vector.broadcast %cst_33 : f32 to vector<2x32xf32>
    %78 = tpu.concatenate %77, %76, %77 in 0 : vector<2x32xf32>, vector<17x32xf32>, vector<2x32xf32> -> vector<21x32xf32>
    %79 = vector.extract_strided_slice %78 {offsets = [0, 0], sizes = [17, 32], strides = [1, 1]} : vector<21x32xf32> to vector<17x32xf32>
    %80 = vector.extract_strided_slice %78 {offsets = [1, 0], sizes = [17, 32], strides = [1, 1]} : vector<21x32xf32> to vector<17x32xf32>
    %81 = vector.extract_strided_slice %78 {offsets = [2, 0], sizes = [17, 32], strides = [1, 1]} : vector<21x32xf32> to vector<17x32xf32>
    %82 = vector.extract_strided_slice %78 {offsets = [3, 0], sizes = [17, 32], strides = [1, 1]} : vector<21x32xf32> to vector<17x32xf32>
    %83 = vector.extract_strided_slice %78 {offsets = [4, 0], sizes = [17, 32], strides = [1, 1]} : vector<21x32xf32> to vector<17x32xf32>
    %84 = tpu.concatenate %79, %80, %81, %82, %83 in 1 : vector<17x32xf32>, vector<17x32xf32>, vector<17x32xf32>, vector<17x32xf32>, vector<17x32xf32> -> vector<17x160xf32>
    %c0_34 = arith.constant 0 : index
    %c0_35 = arith.constant 0 : index
    %85 = vector.load %arg11[%c0_34, %c0_35] : memref<160x32xf32, #tpu.memory_space<vmem>>, vector<160x32xf32>
    %cst_36 = arith.constant dense<0.000000e+00> : vector<17x32xf32>
    %86 = tpu.matmul %84, %85, %cst_36 {dimension_numbers = #tpu.dot_dimension_numbers<[1], [0], [0], [1], [0, 0, 1, 1], [], []>} : vector<17x160xf32>, vector<160x32xf32>, vector<17x32xf32> -> vector<17x32xf32>
    %c0_37 = arith.constant 0 : index
    %c0_38 = arith.constant 0 : index
    %87 = vector.load %arg12[%c0_37, %c0_38] : memref<1x32xf32, #tpu.memory_space<vmem>>, vector<1x32xf32>
    %88 = vector.broadcast %87 : vector<1x32xf32> to vector<17x32xf32>
    %89 = arith.mulf %86, %88 : vector<17x32xf32>
    %c0_39 = arith.constant 0 : index
    %c0_40 = arith.constant 0 : index
    %90 = vector.load %arg13[%c0_39, %c0_40] : memref<1x32xf32, #tpu.memory_space<vmem>>, vector<1x32xf32>
    %91 = vector.broadcast %90 : vector<1x32xf32> to vector<17x32xf32>
    %92 = arith.addf %89, %91 : vector<17x32xf32>
    %cst_41 = arith.constant 0.000000e+00 : f32
    %93 = vector.broadcast %cst_41 : f32 to vector<17x32xf32>
    %94 = arith.cmpf oge, %92, %93 : vector<17x32xf32>
    %cst_42 = arith.constant 2.000000e-01 : f32
    %95 = vector.broadcast %cst_42 : f32 to vector<17x32xf32>
    %96 = arith.mulf %95, %92 : vector<17x32xf32>
    %97 = arith.select %94, %92, %96 : vector<17x32xi1>, vector<17x32xf32>
    %cst_43 = arith.constant 0.000000e+00 : f32
    %98 = vector.broadcast %cst_43 : f32 to vector<1x32xf32>
    %99 = tpu.concatenate %98, %97, %98 in 0 : vector<1x32xf32>, vector<17x32xf32>, vector<1x32xf32> -> vector<19x32xf32>
    %100 = vector.extract_strided_slice %99 {offsets = [0, 0], sizes = [17, 32], strides = [1, 1]} : vector<19x32xf32> to vector<17x32xf32>
    %101 = vector.extract_strided_slice %99 {offsets = [1, 0], sizes = [17, 32], strides = [1, 1]} : vector<19x32xf32> to vector<17x32xf32>
    %102 = vector.extract_strided_slice %99 {offsets = [2, 0], sizes = [17, 32], strides = [1, 1]} : vector<19x32xf32> to vector<17x32xf32>
    %103 = tpu.concatenate %100, %101, %102 in 1 : vector<17x32xf32>, vector<17x32xf32>, vector<17x32xf32> -> vector<17x96xf32>
    %c0_44 = arith.constant 0 : index
    %c0_45 = arith.constant 0 : index
    %104 = vector.load %arg14[%c0_44, %c0_45] : memref<96x16xf32, #tpu.memory_space<vmem>>, vector<96x16xf32>
    %cst_46 = arith.constant dense<0.000000e+00> : vector<17x16xf32>
    %105 = tpu.matmul %103, %104, %cst_46 {dimension_numbers = #tpu.dot_dimension_numbers<[1], [0], [0], [1], [0, 0, 1, 1], [], []>} : vector<17x96xf32>, vector<96x16xf32>, vector<17x16xf32> -> vector<17x16xf32>
    %c0_47 = arith.constant 0 : index
    %c0_48 = arith.constant 0 : index
    %106 = vector.load %arg15[%c0_47, %c0_48] : memref<1x16xf32, #tpu.memory_space<vmem>>, vector<1x16xf32>
    %107 = vector.broadcast %106 : vector<1x16xf32> to vector<17x16xf32>
    %108 = arith.mulf %105, %107 : vector<17x16xf32>
    %c0_49 = arith.constant 0 : index
    %c0_50 = arith.constant 0 : index
    %109 = vector.load %arg16[%c0_49, %c0_50] : memref<1x16xf32, #tpu.memory_space<vmem>>, vector<1x16xf32>
    %110 = vector.broadcast %109 : vector<1x16xf32> to vector<17x16xf32>
    %111 = arith.addf %108, %110 : vector<17x16xf32>
    %cst_51 = arith.constant 0.000000e+00 : f32
    %112 = vector.broadcast %cst_51 : f32 to vector<17x16xf32>
    %113 = arith.cmpf oge, %111, %112 : vector<17x16xf32>
    %cst_52 = arith.constant 2.000000e-01 : f32
    %114 = vector.broadcast %cst_52 : f32 to vector<17x16xf32>
    %115 = arith.mulf %114, %111 : vector<17x16xf32>
    %116 = arith.select %113, %111, %115 : vector<17x16xi1>, vector<17x16xf32>
    %c0_53 = arith.constant 0 : index
    %c0_54 = arith.constant 0 : index
    %117 = vector.load %arg17[%c0_53, %c0_54] : memref<16x16xf32, #tpu.memory_space<vmem>>, vector<16x16xf32>
    %cst_55 = arith.constant dense<0.000000e+00> : vector<17x16xf32>
    %118 = tpu.matmul %16, %117, %cst_55 {dimension_numbers = #tpu.dot_dimension_numbers<[1], [0], [0], [1], [0, 0, 1, 1], [], []>} : vector<17x16xf32>, vector<16x16xf32>, vector<17x16xf32> -> vector<17x16xf32>
    %c0_56 = arith.constant 0 : index
    %c0_57 = arith.constant 0 : index
    %119 = vector.load %arg18[%c0_56, %c0_57] : memref<1x16xf32, #tpu.memory_space<vmem>>, vector<1x16xf32>
    %120 = vector.broadcast %23 : vector<17x1xf32> to vector<17x16xf32>
    %121 = vector.broadcast %119 : vector<1x16xf32> to vector<17x16xf32>
    %122 = arith.mulf %120, %121 : vector<17x16xf32>
    %123 = arith.addf %118, %122 : vector<17x16xf32>
    %c0_58 = arith.constant 0 : index
    %c0_59 = arith.constant 0 : index
    %124 = vector.load %arg19[%c0_58, %c0_59] : memref<1x16xf32, #tpu.memory_space<vmem>>, vector<1x16xf32>
    %125 = vector.broadcast %124 : vector<1x16xf32> to vector<17x16xf32>
    %126 = arith.mulf %123, %125 : vector<17x16xf32>
    %c0_60 = arith.constant 0 : index
    %c0_61 = arith.constant 0 : index
    %127 = vector.load %arg20[%c0_60, %c0_61] : memref<1x16xf32, #tpu.memory_space<vmem>>, vector<1x16xf32>
    %128 = vector.broadcast %127 : vector<1x16xf32> to vector<17x16xf32>
    %129 = arith.addf %126, %128 : vector<17x16xf32>
    %130 = arith.addf %116, %129 : vector<17x16xf32>
    %cst_62 = arith.constant 0.000000e+00 : f32
    %131 = vector.broadcast %cst_62 : f32 to vector<17x16xf32>
    %132 = arith.cmpf oge, %130, %131 : vector<17x16xf32>
    %cst_63 = arith.constant 0.00999999977 : f32
    %133 = vector.broadcast %cst_63 : f32 to vector<17x16xf32>
    %134 = arith.mulf %133, %130 : vector<17x16xf32>
    %135 = arith.select %132, %130, %134 : vector<17x16xi1>, vector<17x16xf32>
    %c0_64 = arith.constant 0 : index
    %c0_65 = arith.constant 0 : index
    %c0_66 = arith.constant 0 : index
    %136 = vector.load %arg21[%c0_64, %c0_65, %c0_66] : memref<1x17x16xf32, #tpu.memory_space<vmem>>, vector<1x17x16xf32>
    %137 = vector.shape_cast %136 : vector<1x17x16xf32> to vector<17x16xf32>
    %138 = vector.shape_cast %135 : vector<17x16xf32> to vector<1x17x16xf32>
    tpu.vector_store %arg21[%c0_64, %c0_65, %c0_66], %138 {strides = array<i32>} : memref<1x17x16xf32, #tpu.memory_space<vmem>>, vector<1x17x16xf32>,
    return
  }
  func.func @transform_0(%arg0: i32) -> (i32, i32, i32) {
    %c0_i32 = arith.constant 0 : i32
    %c0_i32_0 = arith.constant 0 : i32
    %c0_i32_1 = arith.constant 0 : i32
    return %arg0, %c0_i32, %c0_i32_0 : i32, i32, i32
  }
  func.func @transform_1(%arg0: i32) -> (i32, i32, i32) {
    %c0_i32 = arith.constant 0 : i32
    %c0_i32_0 = arith.constant 0 : i32
    %c0_i32_1 = arith.constant 0 : i32
    return %arg0, %c0_i32, %c0_i32_0 : i32, i32, i32
  }
  func.func @transform_2(%arg0: i32) -> (i32, i32) {
    %c0_i32 = arith.constant 0 : i32
    %c0_i32_0 = arith.constant 0 : i32
    %c0_i32_1 = arith.constant 0 : i32
    return %c0_i32, %c0_i32_0 : i32, i32
  }
  func.func @transform_3(%arg0: i32) -> (i32, i32) {
    %c0_i32 = arith.constant 0 : i32
    %c0_i32_0 = arith.constant 0 : i32
    %c0_i32_1 = arith.constant 0 : i32
    return %c0_i32, %c0_i32_0 : i32, i32
  }
  func.func @transform_4(%arg0: i32) -> (i32, i32) {
    %c0_i32 = arith.constant 0 : i32
    %c0_i32_0 = arith.constant 0 : i32
    %c0_i32_1 = arith.constant 0 : i32
    return %c0_i32, %c0_i32_0 : i32, i32
  }
  func.func @transform_5(%arg0: i32) -> (i32, i32) {
    %c0_i32 = arith.constant 0 : i32
    %c0_i32_0 = arith.constant 0 : i32
    %c0_i32_1 = arith.constant 0 : i32
    return %c0_i32, %c0_i32_0 : i32, i32
  }
  func.func @transform_6(%arg0: i32) -> (i32, i32) {
    %c0_i32 = arith.constant 0 : i32
    %c0_i32_0 = arith.constant 0 : i32
    %c0_i32_1 = arith.constant 0 : i32
    return %c0_i32, %c0_i32_0 : i32, i32
  }
  func.func @transform_7(%arg0: i32) -> (i32, i32) {
    %c0_i32 = arith.constant 0 : i32
    %c0_i32_0 = arith.constant 0 : i32
    %c0_i32_1 = arith.constant 0 : i32
    return %c0_i32, %c0_i32_0 : i32, i32
  }
  func.func @transform_8(%arg0: i32) -> (i32, i32) {
    %c0_i32 = arith.constant 0 : i32
    %c0_i32_0 = arith.constant 0 : i32
    %c0_i32_1 = arith.constant 0 : i32
    return %c0_i32, %c0_i32_0 : i32, i32
  }
  func.func @transform_9(%arg0: i32) -> (i32, i32) {
    %c0_i32 = arith.constant 0 : i32
    %c0_i32_0 = arith.constant 0 : i32
    %c0_i32_1 = arith.constant 0 : i32
    return %c0_i32, %c0_i32_0 : i32, i32
  }
  func.func @transform_10(%arg0: i32) -> (i32, i32) {
    %c0_i32 = arith.constant 0 : i32
    %c0_i32_0 = arith.constant 0 : i32
    %c0_i32_1 = arith.constant 0 : i32
    return %c0_i32, %c0_i32_0 : i32, i32
  }
  func.func @transform_11(%arg0: i32) -> (i32, i32) {
    %c0_i32 = arith.constant 0 : i32
    %c0_i32_0 = arith.constant 0 : i32
    %c0_i32_1 = arith.constant 0 : i32
    return %c0_i32, %c0_i32_0 : i32, i32
  }
  func.func @transform_12(%arg0: i32) -> (i32, i32) {
    %c0_i32 = arith.constant 0 : i32
    %c0_i32_0 = arith.constant 0 : i32
    %c0_i32_1 = arith.constant 0 : i32
    return %c0_i32, %c0_i32_0 : i32, i32
  }
  func.func @transform_13(%arg0: i32) -> (i32, i32) {
    %c0_i32 = arith.constant 0 : i32
    %c0_i32_0 = arith.constant 0 : i32
    %c0_i32_1 = arith.constant 0 : i32
    return %c0_i32, %c0_i32_0 : i32, i32
  }
  func.func @transform_14(%arg0: i32) -> (i32, i32) {
    %c0_i32 = arith.constant 0 : i32
    %c0_i32_0 = arith.constant 0 : i32
    %c0_i32_1 = arith.constant 0 : i32
    return %c0_i32, %c0_i32_0 : i32, i32
  }
  func.func @transform_15(%arg0: i32) -> (i32, i32) {
    %c0_i32 = arith.constant 0 : i32
    %c0_i32_0 = arith.constant 0 : i32
    %c0_i32_1 = arith.constant 0 : i32
    return %c0_i32, %c0_i32_0 : i32, i32
  }
  func.func @transform_16(%arg0: i32) -> (i32, i32) {
    %c0_i32 = arith.constant 0 : i32
    %c0_i32_0 = arith.constant 0 : i32
    %c0_i32_1 = arith.constant 0 : i32
    return %c0_i32, %c0_i32_0 : i32, i32
  }
  func.func @transform_17(%arg0: i32) -> (i32, i32) {
    %c0_i32 = arith.constant 0 : i32
    %c0_i32_0 = arith.constant 0 : i32
    %c0_i32_1 = arith.constant 0 : i32
    return %c0_i32, %c0_i32_0 : i32, i32
  }
  func.func @transform_18(%arg0: i32) -> (i32, i32) {
    %c0_i32 = arith.constant 0 : i32
    %c0_i32_0 = arith.constant 0 : i32
    %c0_i32_1 = arith.constant 0 : i32
    return %c0_i32, %c0_i32_0 : i32, i32
  }
  func.func @transform_19(%arg0: i32) -> (i32, i32) {
    %c0_i32 = arith.constant 0 : i32
    %c0_i32_0 = arith.constant 0 : i32
    %c0_i32_1 = arith.constant 0 : i32
    return %c0_i32, %c0_i32_0 : i32, i32
  }
  func.func @transform_20(%arg0: i32) -> (i32, i32, i32) {
    %c0_i32 = arith.constant 0 : i32
    %c0_i32_0 = arith.constant 0 : i32
    %c0_i32_1 = arith.constant 0 : i32
    return %arg0, %c0_i32, %c0_i32_0 : i32, i32, i32
  }
}

</mosaic_0001>

<bundles_post_ra>
// kernel: resnet_up_block_forward.1
= control target key start
LH: loop header
LB: loop body
LE: loop exit
PB: predicated region body
PF: predicated region fallthrough
CT: control target
= control target key end

     0   :  { %s2569_s0 = inlined_call_operand.vmem [shape: f32[2,16,8], index: 0, kind: input, shape index: {}]   ;;  %s2570_s1 = inlined_call_operand.vmem [shape: f32[2,1,8], index: 1, kind: input, shape index: {}]   ;;  %s2571_s2 = inlined_call_operand.vmem [shape: f32[17,8], index: 2, kind: input, shape index: {}]   ;;  %s2572_s3 = inlined_call_operand.vmem [shape: f32[16,16], index: 3, kind: input, shape index: {}]   ;;  %s2573_s4 = inlined_call_operand.vmem [shape: f32[1,16], index: 4, kind: input, shape index: {}]   ;;  %s2574_s5 = inlined_call_operand.vmem [shape: f32[1,16], index: 5, kind: input, shape index: {}]   ;;  %s2575_s6 = inlined_call_operand.vmem [shape: f32[80,32], index: 6, kind: input, shape index: {}]   ;;  %s2576_s7 = inlined_call_operand.vmem [shape: f32[5,32], index: 7, kind: input, shape index: {}]   ;;  %s2577_s8 = inlined_call_operand.vmem [shape: f32[1,32], index: 8, kind: input, shape index: {}]   ;;  %s2578_s9 = inlined_call_operand.vmem [shape: f32[1,32], index: 9, kind: input, shape index: {}]   ;;  %s2579_s10 = inlined_call_operand.vmem [shape: f32[160,32], index: 10, kind: input, shape index: {}]   ;;  %s2580_s11 = inlined_call_operand.vmem [shape: f32[1,32], index: 11, kind: input, shape index: {}]   ;;  %s2581_s12 = inlined_call_operand.vmem [shape: f32[1,32], index: 12, kind: input, shape index: {}]   ;;  %s2582_s13 = inlined_call_operand.vmem [shape: f32[96,16], index: 13, kind: input, shape index: {}]   ;;  %s2583_s14 = inlined_call_operand.vmem [shape: f32[1,16], index: 14, kind: input, shape index: {}]   ;;  %s2584_s15 = inlined_call_operand.vmem [shape: f32[1,16], index: 15, kind: input, shape index: {}]   ;;  %s2585_s16 = inlined_call_operand.vmem [shape: f32[16,16], index: 16, kind: input, shape index: {}]   ;;  %s2586_s17 = inlined_call_operand.vmem [shape: f32[1,16], index: 17, kind: input, shape index: {}]   ;;  %s2587_s18 = inlined_call_operand.vmem [shape: f32[1,16], index: 18, kind: input, shape index: {}]   ;;  %s2588_s19 = inlined_call_operand.vmem [shape: f32[1,16], index: 19, kind: input, shape index: {}]   ;;  %s2589_s20 = inlined_call_operand.vmem [shape: f32[2,17,16], index: 20, kind: output, shape index: {}]  }
   0x1   :  { %2595 = sst [smem:[#allocation2_spill]] %s2569_s0 }
   0x2   :  { %2596 = sst [smem:[#allocation3_spill]] %s2570_s1  ;;  %s2134_s1 = smov 0  }
   0x3   :  { %2597 = sst [smem:[#allocation4_spill]] %s2571_s2 }
   0x4   :  { %2598 = sst [smem:[#allocation5_spill]] %s2572_s3 }
   0x5   :  { %2599 = sst [smem:[#allocation6_spill]] %s2573_s4 }
   0x6 LB: > { %s1742_s22 = sadd.s32 4294967295, %s2017_s1   ;;  %p1746_p0 = scmp.ge.s32.totalorder %s2017_s1, 1  ;;  %s2017_s1 = sphi %s2134_s1, %s30_s1  }
   0x7   : > { %p570_p1 = scmp.lt.s32.totalorder %s2017_s1, 3 }
   0x9   : > { %p571_p2 = pnand %p1746_p0, %p570_p1 }
   0xa   : > { %p631_p3 = scmp.lt.s32.totalorder (!%p571_p2), %s1742_s22, 1  ;;  %s2600_s2 = sld [smem:[#allocation5_spill]] (!%p571_p2)  ;;  %v2019_v1 = vmov (!%p571_p2), 0.0|0.0   ;;  %vm2020_vm0 = vmmov (!%p571_p2), 0   ;;  %v2021_v4 = vmov (!%p571_p2), 0.0   ;;  %vm648_vm1 = vcmask (!%p571_p2), 1040384  }
   0xb   : > { %574 = sbr.rel (%p571_p2) target bundleno = 1453 (0x5ad), region = 100  ;;  %1911 = vmatprep.subr.bf16.mxu1 (!%p571_p2), %v2019_v1  ;;  %1929 = vmatprep.subr.bf16.mxu0 (!%p571_p2), %v2019_v1  ;;  %s2601_s4 = sld [smem:[#allocation2_spill]] (!%p571_p2)  ;;  %vm659_vm2 = vcmask (!%p571_p2), 1046528   ;;  %vm674_vm3 = vcmask (!%p571_p2), 64512   ;;  %vm680_vm4 = vcmask (!%p571_p2), 130048   ;;  %v919_v23 = vld [vmem:[%s2575_s6] sm:$0xff] (!%p571_p2) }
   0xc   : > { %1827 = vmatprep.mubr.msk.f32.mxu1 (!%p571_p2), %vm2020_vm0, %v2021_v4  ;;  %s2022_s30 = smov (!%p571_p2), 8   ;;  %v920_v24 = vld [vmem:[%s2575_s6 + $0x8] sm:$0xff] (!%p571_p2)  ;;  %v921_v25 = vld [vmem:[%s2575_s6 + $0x10] sm:$0xff] (!%p571_p2)  ;;  %v922_v27 = vld [vmem:[%s2575_s6 + $0x18] sm:$0xff] (!%p571_p2)  ;;  %vm819_vm5 = vcmask (!%p571_p2), 1041408   ;;  %vm859_vm6 = vcmask (!%p571_p2), 1045504  }
   0xd   : > { %v1915_v26 = vpack.c.bf16 (!%p571_p2), %v920_v24, %v919_v23  ;;  %v1918_v28 = vpack.c.bf16 (!%p571_p2), %v922_v27, %v921_v25  ;;  %v923_v29 = vld [vmem:[%s2575_s6 + $0x20] sm:$0xff] (!%p571_p2)  ;;  %v924_v30 = vld [vmem:[%s2575_s6 + $0x28] sm:$0xff] (!%p571_p2)  ;;  %v925_v32 = vld [vmem:[%s2575_s6 + $0x30] sm:$0xff] (!%p571_p2)  ;;  %s2592_s21 = smov (!%p571_p2), 32   ;;  %s2024_s23 = smov (!%p571_p2), 16   ;;  %vm889_vm7 = vcmask (!%p571_p2), 1043456  }
   0xe   : > { %v1921_v31 = vpack.c.bf16 (!%p571_p2), %v924_v30, %v923_v29  ;;  %v926_v33 = vld [vmem:[%s2575_s6 + $0x38] sm:$0xff] (!%p571_p2)  ;;  %v1754_v37 = vld [vmem:[%s2574_s5] ss:$0 sm:$0xff] (!%p571_p2)  ;;  %v928_v43 = vld [vmem:[%s2575_s6 + $0x48] sm:$0xff] (!%p571_p2)  ;;  %vm874_vm8 = vcmask (!%p571_p2), 1044480   ;;  %vm828_vm9 = vcmask (!%p571_p2), 1042432  }
   0xf   : > { %v1924_v34 = vpack.c.bf16 (!%p571_p2), %v926_v33, %v925_v32  ;;  %v927_v42 = vld [vmem:[%s2575_s6 + $0x40] sm:$0xff] (!%p571_p2)  ;;  %s2025_s24 = smov (!%p571_p2), 64   ;;  %s2026_s25 = smov (!%p571_p2), 48   ;;  %vm812_vm10 = vcmask (!%p571_p2), 57344   ;;  %v2027_v30 = vmov (!%p571_p2), 0   ;;  %vm907_vm11 = vcmask (!%p571_p2), 261120  }
  0x10   : > { %v678_v0 = vld [vmem:[%s2600_s2] sm:$0xff] (!%p571_p2)  ;;  %v679_v2 = vld [vmem:[%s2600_s2 + $0x8] sm:$0xff] (!%p571_p2)  ;;  %v1927_v47 = vpack.c.bf16 (!%p571_p2), %v928_v43, %v927_v42  ;;  %s2603_s27 = sld [smem:[#allocation3_spill]] (!%p571_p2)  ;;  %2000 = vset.pattern.permute.xlu0 (!%p571_p2), %v2027_v30  ;;  %1999 = vset.pattern.permute.xlu1 (!%p571_p2), %v2027_v30  ;;  %vm911_vm12 = vcmask (!%p571_p2), 392192   ;;  %vm915_vm13 = vcmask (!%p571_p2), 523264   ;;  %vm951_vm14 = vcmask (!%p571_p2), 654336  }
  0x11   : > { %v1912_v3 = vpack.c.bf16 (!%p571_p2), %v679_v2, %v678_v0  ;;  %v1760_v30 = vld [vmem:[%s2576_s7 + $0x1] ss:$0 sm:$0xff] (!%p571_p2)  ;;  %s2605_s2 = smov (!%p571_p2), 32  }
  0x12   : > { %s2607_s22 = smov (!%p631_p3, %s1742_s22), 1 }
  0x13   : > { %s1784_s26 = sshll.u32 %s2607_s22, 4  ;;  %1913 = vmatpush3.bf16.msra.mxu1 %v1912_v3 }
  0x14   : > { %s635_s29 = scalar_lea.vmem %s2601_s4, %s1784_s26  ;;  %1914 = vmatprep.subr.bf16.mxu1 %v2019_v1  ;;  %s2602_s26 = sld [smem:[#allocation6_spill]] }
  0x15   : > { %v644_v5 = vld [vmem:[%s635_s29] sm:$0xff]  ;;  %v645_v6 = vld [vmem:[%s635_s29 + $0x8] sm:$0xff] }
  0x16   : > { %v649_v7 = vrot.slane %v644_v5, 7  ;;  %v650_v8 = vrot.slane %v645_v6, 7  ;;  %s638_s28 = scalar_lea.vmem %s2603_s27, %s2607_s22 }
  0x18   : > { %v651_v9 = vsel %vm648_vm1, %v649_v7, %v650_v8  ;;  %v655_v10 = vsel %vm648_vm1, 0.0, %v649_v7  ;;  %v656_v11 = vsel %vm648_vm1, %v650_v8, 0.0 }
  0x19   : > { %v660_v12 = vrot.slane %v655_v10, 1  ;;  %v661_v13 = vrot.slane %v651_v9, 1  ;;  %v663_v14 = vrot.slane %v656_v11, 1 }
  0x1a   : > { %v1753_v35 = vld [vmem:[%s2602_s26] ss:$0 sm:$0xff] }
  0x1b   : > { %v662_v15 = vsel %vm659_vm2, %v660_v12, %v661_v13  ;;  %669 = vrot.lane.b32.xlu1 %v663_v14, %s2022_s30  ;;  %v664_v16 = vsel %vm659_vm2, %v661_v13, %v663_v14 }
  0x1c   : > { %665 = vrot.lane.b32.xlu0 %v662_v15, %s2022_s30 }
  0x20   : > { %667 = vrot.lane.b32.xlu0 %v664_v16, %s2022_s30  ;;  %s2604_s30 = sld [smem:[#allocation4_spill]] }
  0x26   : > { %v793_v23 = vld [vmem:[%s2604_s30] sm:$0xff]  ;;  %v794_v24 = vld [vmem:[%s2604_s30 + $0x8] sm:$0xff] }
  0x8d   : > { %v670_v20 = vpop.permute.xlu1 %669 }
  0x8e   : > { %v666_v17 = vpop.permute.xlu0 %665  ;;  %v677_v22 = vsel %vm674_vm3, %v656_v11, %v670_v20  ;;  %v795_v20 = vld [vmem:[%s2604_s30 + $0x10] sm:$0x1] }
  0x8f   : > { %v675_v18 = vsel %vm674_vm3, %v655_v10, %v666_v17 }
  0x90   : > { %1828 = vmatmul.mubr.msk.f32.vlgmr.msra.gmra.mrb[0].mxu1 %vm680_vm4, %v675_v18 }
  0x91   : > { %1830 = vmatprep.mubr.msk.f32.mxu1 %vm2020_vm0, %v2021_v4  ;;  %1916 = vmatpush3.bf16.msra.mxu1 %v1915_v26 }
  0x92   : > { %v668_v19 = vpop.permute.xlu0 %667  ;;  %1917 = vmatprep.subr.bf16.mxu1 %v2019_v1 }
  0x93   : > { %v676_v21 = vsel %vm674_vm3, %v651_v9, %v668_v19 }
  0x94   : > { %1831 = vmatmul.mubr.msk.f32.gmra.mrb[2].mxu1 %vm680_vm4, %v676_v21  ;;  %v1755_v21 = vld [vmem:[%s638_s28] ss:$0 sm:$0xff] }
  0x95   : > { %1833 = vmatprep.mubr.msk.f32.mxu1 %vm2020_vm0, %v2021_v4  ;;  %1919 = vmatpush3.bf16.msra.mxu1 %v1918_v28  ;;  %v803_v26 = vmul.f32 %v1755_v21, %v793_v23  ;;  %v804_v27 = vmul.f32 %v1755_v21, %v794_v24  ;;  %v1240_v24 = vld [vmem:[%s2579_s10 + $0x50] sm:$0xff] }
  0x96   : > { %1920 = vmatprep.subr.bf16.mxu1 %v2019_v1 }
  0x97   : > { %v806_v28 = vsel %vm674_vm3, %v803_v26, 0.0  ;;  %v809_v29 = vsel %vm674_vm3, %v804_v27, 0.0  ;;  %v1761_v27 = vld [vmem:[%s2576_s7 + $0x2] ss:$0 sm:$0xff] }
  0x98   : > { %1834 = vmatmul.mubr.msk.f32.gmra.mrb[4].mxu1 %vm680_vm4, %v677_v22  ;;  %v805_v22 = vmul.f32 %v1755_v21, %v795_v20  ;;  %v1238_v21 = vld [vmem:[%s2579_s10 + $0x40] sm:$0xff] }
  0x99   : > { %1856 = vmatprep.mubr.msk.f32.mxu1 %vm2020_vm0, %v2021_v4  ;;  %1922 = vmatpush3.bf16.msra.mxu1 %v1921_v31 }
  0x9a   : > { %1923 = vmatprep.subr.bf16.mxu1 %v2019_v1  ;;  %v813_v25 = vsel %vm812_vm10, %v805_v22, 0.0  ;;  %v1239_v22 = vld [vmem:[%s2579_s10 + $0x48] sm:$0xff] }
  0x9b   : > { %v1942_v23 = vpack.c.bf16 %v1239_v22, %v1238_v21 }
  0x9d   : > { %1925 = vmatpush3.bf16.msra.mxu1 %v1924_v34 }
  0x9e   : > { %1926 = vmatprep.subr.bf16.mxu1 %v2019_v1 }
  0xa1   : > { %1928 = vmatpush3.bf16.msra.mxu1 %v1927_v47 }
  0xa2   : > { %1959 = vmatprep.subr.bf16.mxu1 %v2019_v1 }
 0x163   : > { %v756_v36 = vpop.f32.mrb[0].mxu1 }
 0x164   : > { %v777_v38 = vmul.f32 %v1753_v35, %v756_v36  ;;  %v1829_v39 = vpop.f32.mrb[1].mxu1 }
 0x166   : > { %v2210_v40 = vadd.f32 %v1754_v37, %v777_v38 }
 0x167   : > { %v761_v41 = vpop.f32.mrb[2].mxu1 }
 0x168   : > { %v790_v44 = vmax.f32 %v2210_v40, 0.0  ;;  %v778_v45 = vmul.f32 %v1753_v35, %v761_v41  ;;  %v1832_v46 = vpop.f32.mrb[3].mxu1  ;;  %v1414_v40 = vld [vmem:[%s2582_s13] sm:$0xff] }
 0x16a   : > { %v833_v48 = vrot.slane %v790_v44, 6  ;;  %v2221_v49 = vadd.f32 %v1754_v37, %v778_v45 }
 0x16b   : > { %v766_v50 = vpop.f32.mrb[4].mxu1 }
 0x16c   : > { %v791_v51 = vmax.f32 %v2221_v49, 0.0  ;;  %v779_v52 = vmul.f32 %v1753_v35, %v766_v50  ;;  %v1835_v53 = vpop.f32.mrb[5].mxu1  ;;  %v2226_v54 = vsel %vm819_vm5, 0.0, %v833_v48  ;;  %v1416_v49 = vld [vmem:[%s2582_s13 + $0x10] sm:$0xff] }
 0x16d   : > { %v860_v59 = vrot.slane %v2226_v54, 2  ;;  %v845_v61 = vrot.slane %v2226_v54, 1  ;;  %v890_v7 = vrot.slane %v2226_v54, 4  ;;  %v875_v8 = vrot.slane %v2226_v54, 3 }
 0x16e   : > { %v834_v55 = vrot.slane %v791_v51, 6  ;;  %v2230_v56 = vadd.f32 %v1754_v37, %v779_v52 }
 0x170   : > { %v2233_v57 = vsel %vm819_vm5, %v833_v48, %v834_v55  ;;  %v792_v58 = vmax.f32 %v2230_v56, 0.0 }
 0x171   : > { %v861_v60 = vrot.slane %v2233_v57, 2  ;;  %v846_v62 = vrot.slane %v2233_v57, 1  ;;  %v891_v3 = vrot.slane %v2233_v57, 4  ;;  %v876_v5 = vrot.slane %v2233_v57, 3 }
 0x172   : > { %v836_v63 = vrot.slane %v792_v58, 6 }
 0x173   : > { %v862_v0 = vsel %vm859_vm6, %v860_v59, %v861_v60  ;;  %v847_v2 = vsel %vm659_vm2, %v845_v61, %v846_v62  ;;  %v892_v9 = vsel %vm889_vm7, %v890_v7, %v891_v3  ;;  %v877_v10 = vsel %vm874_vm8, %v875_v8, %v876_v5 }
 0x174   : > { %v837_v6 = vsel %vm819_vm5, %v834_v55, %v836_v63  ;;  %865 = vrot.lane.b32.xlu0 %v862_v0, %s2592_s21  ;;  %850 = vrot.lane.b32.xlu1 %v847_v2, %s2024_s23 }
 0x175   : > { %v842_v11 = vsel %vm828_vm9, %v837_v6, 0.0 }
 0x176   : > { %v863_v12 = vrot.slane %v842_v11, 2  ;;  %v848_v13 = vrot.slane %v842_v11, 1  ;;  %v893_v16 = vrot.slane %v842_v11, 4  ;;  %v878_v17 = vrot.slane %v842_v11, 3 }
 0x178   : > { %895 = vrot.lane.b32.xlu0 %v892_v9, %s2025_s24  ;;  %880 = vrot.lane.b32.xlu1 %v877_v10, %s2026_s25  ;;  %v864_v14 = vsel %vm859_vm6, %v861_v60, %v863_v12  ;;  %v849_v15 = vsel %vm659_vm2, %v846_v62, %v848_v13  ;;  %v894_v18 = vsel %vm889_vm7, %v891_v3, %v893_v16  ;;  %v1230_v9 = vld [vmem:[%s2579_s10] sm:$0xff]  ;;  %v1231_v10 = vld [vmem:[%s2579_s10 + $0x8] sm:$0xff] }
 0x179   : > { %v879_v19 = vsel %vm874_vm8, %v876_v5, %v878_v17 }
 0x17c   : > { %869 = vrot.lane.b32.xlu0 %v863_v12, %s2592_s21  ;;  %854 = vrot.lane.b32.xlu1 %v848_v13, %s2024_s23  ;;  %v1930_v12 = vpack.c.bf16 %v1231_v10, %v1230_v9  ;;  %v1233_v13 = vld [vmem:[%s2579_s10 + $0x18] sm:$0xff]  ;;  %v1764_v10 = vld [vmem:[%s2577_s8] ss:$0 sm:$0xff] }
 0x17e   : > { %1931 = vmatpush1.bf16.msra.mxu0 %v1930_v12 }
 0x17f   : > { %1932 = vmatprep.subr.bf16.mxu0 %v2019_v1 }
 0x180   : > { %867 = vrot.lane.b32.xlu0 %v864_v14, %s2592_s21  ;;  %852 = vrot.lane.b32.xlu1 %v849_v15, %s2024_s23  ;;  %v1234_v15 = vld [vmem:[%s2579_s10 + $0x20] sm:$0xff]  ;;  %s2028_s23 = smov 96   ;;  %s1980_s21 = smul.u32 24, %s2607_s22 }
 0x182   : > { %s643_s26 = scalar_lea.vmem %s2589_s20, %s1980_s21 }
 0x184   : > { %897 = vrot.lane.b32.xlu0 %v894_v18, %s2025_s24  ;;  %882 = vrot.lane.b32.xlu1 %v879_v19, %s2026_s25  ;;  %v1236_v18 = vld [vmem:[%s2579_s10 + $0x30] sm:$0xff]  ;;  %v1237_v19 = vld [vmem:[%s2579_s10 + $0x38] sm:$0xff] }
 0x185   : > { %v1939_v20 = vpack.c.bf16 %v1237_v19, %v1236_v18 }
 0x188   : > { %899 = vrot.lane.b32.xlu0 %v893_v16, %s2025_s24  ;;  %884 = vrot.lane.b32.xlu1 %v878_v17, %s2026_s25  ;;  %v1235_v16 = vld [vmem:[%s2579_s10 + $0x28] sm:$0xff] }
 0x189   : > { %v1936_v17 = vpack.c.bf16 %v1235_v16, %v1234_v15  ;;  %v1765_v16 = vld [vmem:[%s2578_s9] ss:$0 sm:$0xff] }
 0x1a7   : > { %814 = vadd.xlane.f32.xlu0 %v813_v25  ;;  %v1241_v25 = vld [vmem:[%s2579_s10 + $0x58] sm:$0xff] }
 0x1a8   : > { %v1945_v26 = vpack.c.bf16 %v1241_v25, %v1240_v24 }
 0x1ab   : > { %807 = vadd.xlane.f32.xlu0 %v806_v28  ;;  %v1762_v28 = vld [vmem:[%s2576_s7 + $0x3] ss:$0 sm:$0xff] }
 0x1ac   : > { %810 = vadd.xlane.f32.xlu1 %v809_v29  ;;  %v1756_v29 = vld [vmem:[%s2576_s7] ss:$0 sm:$0xff] }
 0x1e6   : > { %v866_v31 = vpop.permute.xlu0 %865  ;;  %v851_v32 = vpop.permute.xlu1 %850 }
 0x1e7   : > { %v904_v33 = vsel %vm680_vm4, %v2226_v54, %v851_v32 }
 0x1e8   : > { %v908_v35 = vsel %vm907_vm11, %v904_v33, %v866_v31  ;;  %v1763_v31 = vld [vmem:[%s2576_s7 + $0x4] ss:$0 sm:$0xff] }
 0x1ea   : > { %v896_v34 = vpop.permute.xlu0 %895  ;;  %v881_v36 = vpop.permute.xlu1 %880 }
 0x1eb   : > { %v912_v37 = vsel %vm911_vm12, %v908_v35, %v881_v36 }
 0x1ec   : > { %v916_v38 = vsel %vm915_vm13, %v912_v37, %v896_v34 }
 0x1ed   : > { %1857 = vmatmul.mubr.msk.f32.vlgmr.msra.gmra.mrb[6].mxu1 %vm951_vm14, %v916_v38 }
 0x1ee   : > { %v870_v39 = vpop.permute.xlu0 %869  ;;  %v855_v41 = vpop.permute.xlu1 %854  ;;  %1859 = vmatprep.mubr.msk.f32.mxu1 %vm2020_vm0, %v2021_v4 }
 0x1ef   : > { %v906_v50 = vsel %vm680_vm4, %v842_v11, %v855_v41  ;;  %v1232_v11 = vld [vmem:[%s2579_s10 + $0x10] sm:$0xff] }
 0x1f0   : > { %v910_v55 = vsel %vm907_vm11, %v906_v50, %v870_v39  ;;  %v1933_v14 = vpack.c.bf16 %v1233_v13, %v1232_v11 }
 0x1f2   : > { %v868_v42 = vpop.permute.xlu0 %867  ;;  %v853_v43 = vpop.permute.xlu1 %852  ;;  %1934 = vmatpush1.bf16.msra.mxu0 %v1933_v14 }
 0x1f3   : > { %v905_v45 = vsel %vm680_vm4, %v2233_v57, %v853_v43  ;;  %1935 = vmatprep.subr.bf16.mxu0 %v2019_v1 }
 0x1f4   : > { %v909_v47 = vsel %vm907_vm11, %v905_v45, %v868_v42 }
 0x1f6   : > { %v898_v46 = vpop.permute.xlu0 %897  ;;  %v883_v48 = vpop.permute.xlu1 %882  ;;  %1937 = vmatpush1.bf16.msra.mxu0 %v1936_v17 }
 0x1f7   : > { %v913_v52 = vsel %vm911_vm12, %v909_v47, %v883_v48  ;;  %1938 = vmatprep.subr.bf16.mxu0 %v2019_v1 }
 0x1f8   : > { %v917_v53 = vsel %vm915_vm13, %v913_v52, %v898_v46 }
 0x1f9   : > { %1860 = vmatmul.mubr.msk.f32.gmra.mrb[8].mxu1 %vm951_vm14, %v917_v53 }
 0x1fa   : > { %v900_v54 = vpop.permute.xlu0 %899  ;;  %v885_v59 = vpop.permute.xlu1 %884  ;;  %1862 = vmatprep.mubr.msk.f32.mxu1 %vm2020_vm0, %v2021_v4  ;;  %1940 = vmatpush1.bf16.msra.mxu0 %v1939_v20 }
 0x1fb   : > { %v914_v57 = vsel %vm911_vm12, %v910_v55, %v885_v59  ;;  %1941 = vmatprep.subr.bf16.mxu0 %v2019_v1 }
 0x1fc   : > { %v918_v60 = vsel %vm915_vm13, %v914_v57, %v900_v54 }
 0x1fd   : > { %1863 = vmatmul.mubr.msk.f32.gmra.mrb[10].mxu1 %vm951_vm14, %v918_v60 }
 0x1fe   : > { %1889 = vmatprep.mubr.msk.f32.mxu1 %vm2020_vm0, %v2021_v4  ;;  %1943 = vmatpush1.bf16.msra.mxu0 %v1942_v23 }
 0x1ff   : > { %1944 = vmatprep.subr.bf16.mxu0 %v2019_v1 }
 0x202   : > { %1946 = vmatpush1.bf16.msra.mxu0 %v1945_v26 }
 0x203   : > { %1947 = vmatprep.subr.bf16.mxu0 %v2019_v1 }
 0x234   : > { %v2300_v61 = vpop.xlane.xlu0 %814 }
 0x235   : > { %v823_v62 = vrot.slane %v2300_v61, 6 }
 0x238   : > { %v2303_v63 = vpop.xlane.xlu0 %807 }
 0x239   : > { %v820_v0 = vrot.slane %v2303_v63, 6  ;;  %v2306_v2 = vpop.xlane.xlu1 %810 }
 0x23a   : > { %v821_v3 = vrot.slane %v2306_v2, 6 }
 0x23b   : > { %v827_v5 = vsel %vm819_vm5, 0.0, %v820_v0 }
 0x23c   : > { %932 = vperm.xlu1 %1999, %v827_v5   ;;  %v822_v6 = vsel %vm819_vm5, %v820_v0, %v821_v3  ;;  %v824_v7 = vsel %vm819_vm5, %v821_v3, %v823_v62 }
 0x23d   : > { %936 = vperm.xlu0 %2000, %v822_v6   ;;  %v829_v8 = vsel %vm828_vm9, %v824_v7, 0.0 }
 0x240   : > { %941 = vperm.xlu1 %1999, %v829_v8  }
 0x2bb   : > { %v933_v32 = vpop.permute.xlu1 %932 }
 0x2bc   : > { %v937_v33 = vpop.permute.xlu0 %936  ;;  %v1068_v34 = vmul.f32 %v1761_v27, %v933_v32  ;;  %v1090_v35 = vmul.f32 %v1762_v28, %v933_v32  ;;  %v948_v38 = vmul.f32 %v1756_v29, %v933_v32  ;;  %v1046_v39 = vmul.f32 %v1760_v30, %v933_v32 }
 0x2bd   : > { %v1069_v36 = vmul.f32 %v1761_v27, %v937_v33  ;;  %v1091_v37 = vmul.f32 %v1762_v28, %v937_v33  ;;  %v1113_v41 = vmul.f32 %v1763_v31, %v937_v33  ;;  %v1112_v43 = vmul.f32 %v1763_v31, %v933_v32 }
 0x2be   : > { %v1074_v42 = vrot.slane %v1068_v34, 2  ;;  %v1047_v45 = vmul.f32 %v1760_v30, %v937_v33  ;;  %v1052_v47 = vrot.slane %v1046_v39, 1  ;;  %v1096_v50 = vrot.slane %v1090_v35, 3 }
 0x2bf   : > { %v1075_v46 = vrot.slane %v1069_v36, 2  ;;  %v1097_v48 = vrot.slane %v1091_v37, 3  ;;  %v1119_v59 = vrot.slane %v1113_v41, 4  ;;  %v1118_v57 = vrot.slane %v1112_v43, 4  ;;  %v942_v3 = vpop.permute.xlu1 %941 }
 0x2c0   : > { %v1027_v52 = vpop.f32.mrb[6].mxu1  ;;  %v1053_v53 = vrot.slane %v1047_v45, 1  ;;  %v1048_v8 = vmul.f32 %v1760_v30, %v942_v3  ;;  %v1070_v11 = vmul.f32 %v1761_v27, %v942_v3  ;;  %v1092_v13 = vmul.f32 %v1762_v28, %v942_v3  ;;  %v1243_v45 = vld [vmem:[%s2579_s10 + $0x68] sm:$0xff] }
 0x2c1   : > { %v1028_v54 = vadd.f32 %v1027_v52, %v948_v38  ;;  %v1858_v55 = vpop.f32.mrb[7].mxu1  ;;  %v1076_v62 = vsel %vm859_vm6, %v1074_v42, %v1075_v46  ;;  %v1098_v5 = vsel %vm874_vm8, %v1096_v50, %v1097_v48  ;;  %v1120_v7 = vsel %vm889_vm7, %v1118_v57, %v1119_v59 }
 0x2c2   : > { %v1054_v60 = vsel %vm659_vm2, %v1052_v47, %v1053_v53  ;;  %v1055_v14 = vrot.slane %v1048_v8, 1  ;;  %v949_v17 = vmul.f32 %v1756_v29, %v937_v33  ;;  %v1077_v18 = vrot.slane %v1070_v11, 2  ;;  %v1245_v55 = vld [vmem:[%s2579_s10 + $0x78] sm:$0xff] }
 0x2c3   : > { %v1060_v0 = vadd.f32 %v1054_v60, %v1028_v54  ;;  %v1114_v19 = vmul.f32 %v1763_v31, %v942_v3  ;;  %v1099_v24 = vrot.slane %v1092_v13, 3  ;;  %v950_v27 = vmul.f32 %v1756_v29, %v942_v3  ;;  %v1242_v29 = vld [vmem:[%s2579_s10 + $0x60] sm:$0xff]  ;;  %v1244_v54 = vld [vmem:[%s2579_s10 + $0x70] sm:$0xff] }
 0x2c4   : > { %v1056_v25 = vsel %vm659_vm2, %v1053_v53, %v1055_v14  ;;  %v1078_v28 = vsel %vm859_vm6, %v1075_v46, %v1077_v18  ;;  %v1948_v50 = vpack.c.bf16 %v1243_v45, %v1242_v29  ;;  %v1951_v60 = vpack.c.bf16 %v1245_v55, %v1244_v54  ;;  %v1544_v29 = vld [vmem:[%s2585_s16] sm:$0xff]  ;;  %v1545_v45 = vld [vmem:[%s2585_s16 + $0x8] sm:$0xff] }
 0x2c5   : > { %v1082_v6 = vadd.f32 %v1076_v62, %v1060_v0  ;;  %v1121_v30 = vrot.slane %v1114_v19, 4  ;;  %v1100_v33 = vsel %vm874_vm8, %v1097_v48, %v1099_v24 }
 0x2c6   : > { %1949 = vmatpush1.bf16.msra.mxu0 %v1948_v50 }
 0x2c7   : > { %v1104_v9 = vadd.f32 %v1098_v5, %v1082_v6  ;;  %v1122_v39 = vsel %vm889_vm7, %v1119_v59, %v1121_v30  ;;  %1950 = vmatprep.subr.bf16.mxu0 %v2019_v1  ;;  %v1246_v6 = vld [vmem:[%s2579_s10 + $0x80] sm:$0xff] }
 0x2c9   : > { %v1126_v12 = vadd.f32 %v1120_v7, %v1104_v9  ;;  %v1247_v7 = vld [vmem:[%s2579_s10 + $0x88] sm:$0xff] }
 0x2ca   : > { %1952 = vmatpush1.bf16.msra.mxu0 %v1951_v60  ;;  %v1954_v9 = vpack.c.bf16 %v1247_v7, %v1246_v6 }
 0x2cb   : > { %v1136_v15 = vmul.f32 %v1764_v10, %v1126_v12  ;;  %1953 = vmatprep.subr.bf16.mxu0 %v2019_v1 }
 0x2cc   : > { %v1032_v20 = vpop.f32.mrb[8].mxu1 }
 0x2cd   : > { %v1033_v21 = vadd.f32 %v1032_v20, %v949_v17  ;;  %v1861_v22 = vpop.f32.mrb[9].mxu1  ;;  %v1146_v23 = vadd.f32 %v1765_v16, %v1136_v15  ;;  %v1248_v17 = vld [vmem:[%s2579_s10 + $0x90] sm:$0xff] }
 0x2ce   : > { %1955 = vmatpush1.bf16.msra.mxu0 %v1954_v9 }
 0x2cf   : > { %v1061_v26 = vadd.f32 %v1056_v25, %v1033_v21  ;;  %v1152_v37 = vmul.f32 0.2, %v1146_v23  ;;  %vm1149_vm15 = vcmp.ge.f32.partialorder %v1146_v23, 0.0  ;;  %1956 = vmatprep.subr.bf16.mxu0 %v2019_v1 }
 0x2d0   : > { %v1037_v32 = vpop.f32.mrb[10].mxu1 }
 0x2d1   : > { %v1083_v34 = vadd.f32 %v1078_v28, %v1061_v26  ;;  %v1038_v35 = vadd.f32 %v1037_v32, %v950_v27  ;;  %v1864_v36 = vpop.f32.mrb[11].mxu1  ;;  %v1155_v43 = vsel %vm1149_vm15, %v1146_v23, %v1152_v37 }
 0x2d2   : > { %v1161_v53 = vrot.slane %v1155_v43, 6 }
 0x2d3   : > { %v1105_v31 = vadd.f32 %v1100_v33, %v1083_v34  ;;  %v1062_v38 = vadd.f32 %v1055_v14, %v1038_v35 }
 0x2d4   : > { %v1169_v3 = vsel %vm819_vm5, 0.0, %v1161_v53 }
 0x2d5   : > { %v1127_v41 = vadd.f32 %v1122_v39, %v1105_v31  ;;  %v1084_v42 = vadd.f32 %v1077_v18, %v1062_v38  ;;  %v1215_v11 = vrot.slane %v1169_v3, 4  ;;  %v1201_v13 = vrot.slane %v1169_v3, 3  ;;  %v1249_v18 = vld [vmem:[%s2579_s10 + $0x98] sm:$0xff] }
 0x2d6   : > { %v1957_v21 = vpack.c.bf16 %v1249_v18, %v1248_v17  ;;  %v1173_v26 = vrot.slane %v1169_v3, 1  ;;  %v1187_v35 = vrot.slane %v1169_v3, 2  ;;  %v1423_v17 = vld [vmem:[%s2582_s13 + $0x48] sm:$0xff] }
 0x2d7   : > { %v1137_v46 = vmul.f32 %v1764_v10, %v1127_v41  ;;  %v1106_v47 = vadd.f32 %v1099_v24, %v1084_v42 }
 0x2d8   : > { %1958 = vmatpush1.bf16.msra.mxu0 %v1957_v21 }
 0x2d9   : > { %v1147_v48 = vadd.f32 %v1765_v16, %v1137_v46  ;;  %v1128_v52 = vadd.f32 %v1121_v30, %v1106_v47  ;;  %1977 = vmatprep.subr.bf16.mxu0 %v2019_v1 }
 0x2db   : > { %vm1150_vm3 = vcmp.ge.f32.partialorder %v1147_v48, 0.0  ;;  %v1153_v59 = vmul.f32 0.2, %v1147_v48  ;;  %v1138_v57 = vmul.f32 %v1764_v10, %v1128_v52  ;;  %v1978_v52 = vpack.c.bf16 %v1545_v45, %v1544_v29 }
 0x2dd   : > { %v1148_v62 = vadd.f32 %v1765_v16, %v1138_v57  ;;  %v1156_v0 = vsel %vm1150_vm3, %v1147_v48, %v1153_v59 }
 0x2de   : > { %v1162_v5 = vrot.slane %v1156_v0, 6 }
 0x2df   : > { %vm1151_vm10 = vcmp.ge.f32.partialorder %v1148_v62, 0.0  ;;  %v1154_v8 = vmul.f32 0.2, %v1148_v62 }
 0x2e0   : > { %v2406_v10 = vsel %vm819_vm5, %v1161_v53, %v1162_v5 }
 0x2e1   : > { %v1216_v12 = vrot.slane %v2406_v10, 4  ;;  %v1202_v14 = vrot.slane %v2406_v10, 3  ;;  %v1157_v15 = vsel %vm1151_vm10, %v1148_v62, %v1154_v8  ;;  %v1174_v23 = vrot.slane %v2406_v10, 1 }
 0x2e2   : > { %v1164_v16 = vrot.slane %v1157_v15, 6  ;;  %v1188_v34 = vrot.slane %v2406_v10, 2 }
 0x2e3   : > { %v1217_v19 = vsel %vm889_vm7, %v1215_v11, %v1216_v12  ;;  %v1203_v20 = vsel %vm874_vm8, %v1201_v13, %v1202_v14  ;;  %v1175_v30 = vsel %vm659_vm2, %v1173_v26, %v1174_v23  ;;  %v1419_v11 = vld [vmem:[%s2582_s13 + $0x28] sm:$0xff]  ;;  %v1420_v13 = vld [vmem:[%s2582_s13 + $0x30] sm:$0xff] }
 0x2e4   : > { %1766 = vmatprep.mubr.msk.f32.mxu0 %vm907_vm11, %v1217_v19  ;;  %1206 = vrot.lane.b32.xlu1 %v1203_v20, %s2028_s23  ;;  %v1165_v22 = vsel %vm819_vm5, %v1162_v5, %v1164_v16  ;;  %v1189_v37 = vsel %vm859_vm6, %v1187_v35, %v1188_v34  ;;  %v1422_v16 = vld [vmem:[%s2582_s13 + $0x40] sm:$0xff]  ;;  %v1424_v19 = vld [vmem:[%s2582_s13 + $0x50] sm:$0xff]  ;;  %v1425_v20 = vld [vmem:[%s2582_s13 + $0x58] sm:$0xff] }
 0x2e5   : > { %v1170_v24 = vsel %vm828_vm9, %v1165_v22, 0.0  ;;  %vm1226_vm9 = vcmask 785408   ;;  %v1972_v18 = vpack.c.bf16 %v1423_v17, %v1422_v16  ;;  %v1975_v21 = vpack.c.bf16 %v1425_v20, %v1424_v19  ;;  %v1769_v22 = vld [vmem:[%s2580_s11] ss:$0 sm:$0xff] }
 0x2e6   : > { %v1176_v25 = vrot.slane %v1170_v24, 1  ;;  %v1190_v27 = vrot.slane %v1170_v24, 2  ;;  %v1204_v31 = vrot.slane %v1170_v24, 3  ;;  %v1218_v50 = vrot.slane %v1170_v24, 4 }
 0x2e8   : > { %1182 = vrot.lane.b32.xlu1 %v1176_v25, %s2605_s2  ;;  %v1177_v28 = vsel %vm659_vm2, %v1174_v23, %v1176_v25  ;;  %v1191_v36 = vsel %vm859_vm6, %v1188_v34, %v1190_v27  ;;  %v1205_v38 = vsel %vm874_vm8, %v1202_v14, %v1204_v31  ;;  %v1219_v60 = vsel %vm889_vm7, %v1216_v12, %v1218_v50  ;;  %v1421_v14 = vld [vmem:[%s2582_s13 + $0x38] sm:$0xff] }
 0x2e9   : > { %v2001_v32 = vpack.i.bf16 %v1177_v28, %v1175_v30  ;;  %v2006_v33 = vpack.i.bf16 %v1191_v36, %v1189_v37  ;;  %v1969_v15 = vpack.c.bf16 %v1421_v14, %v1420_v13 }
 0x2ec   : > { %2002 = vrot.lane.b32.xlu1 %v2001_v32, %s2605_s2 }
 0x2f0   : > { %2007 = vrot.lane.b32.xlu1 %v2006_v33, %s2025_s24 }
 0x2f4   : > { %1196 = vrot.lane.b32.xlu1 %v1190_v27, %s2025_s24 }
 0x2f8   : > { %1208 = vrot.lane.b32.xlu1 %v1205_v38, %s2028_s23 }
 0x2fc   : > { %1210 = vrot.lane.b32.xlu1 %v1204_v31, %s2028_s23 }
 0x356   : > { %v1207_v39 = vpop.permute.xlu1 %1206 }
 0x35a   : > { %v1183_v41 = vpop.permute.xlu1 %1182 }
 0x35b   : > { %v1222_v6 = vsel %vm907_vm11, %v1170_v24, %v1183_v41  ;;  %v1770_v24 = vld [vmem:[%s2581_s12] ss:$0 sm:$0xff] }
 0x35e   : > { %v2003_v42 = vpop.permute.xlu1 %2002 }
 0x35f   : > { %v2004_v43 = vunpack.i.l.bf16 %v2003_v42  ;;  %v2005_v53 = vunpack.i.h.bf16 %v2003_v42 }
 0x361   : > { %v1220_v48 = vsel %vm907_vm11, %v1169_v3, %v2004_v43  ;;  %v1221_v62 = vsel %vm907_vm11, %v2406_v10, %v2005_v53  ;;  %v1417_v10 = vld [vmem:[%s2582_s13 + $0x18] sm:$0xff] }
 0x362   : > { %v2008_v46 = vpop.permute.xlu1 %2007  ;;  %v1963_v56 = vpack.c.bf16 %v1417_v10, %v1416_v49 }
 0x363   : > { %v2009_v47 = vunpack.i.l.bf16 %v2008_v46  ;;  %v2010_v55 = vunpack.i.h.bf16 %v2008_v46 }
 0x365   : > { %v1223_v54 = vsel %vm915_vm13, %v1220_v48, %v2009_v47  ;;  %v1224_v3 = vsel %vm915_vm13, %v1221_v62, %v2010_v55  ;;  %v1776_v55 = vld [vmem:[%s2586_s17] ss:$0 sm:$0xff] }
 0x366   : > { %v1197_v59 = vpop.permute.xlu1 %1196  ;;  %v1227_v57 = vsel %vm1226_vm9, %v1223_v54, %v1207_v39  ;;  %v1553_v19 = vmul.f32 %v1776_v55, %v2303_v63 }
 0x367   : > { %1321 = vmatmul.mubr.f32.vlgmr.msra.gmra.mrb[0].mxu0 %v1227_v57  ;;  %v1225_v7 = vsel %vm915_vm13, %v1222_v6, %v1197_v59 }
 0x368   : > { %1767 = vmatprep.mubr.msk.f32.mxu0 %vm907_vm11, %v1219_v60  ;;  %1979 = vmatpush3.bf16.msra.mxu0 %v1978_v52 }
 0x36a   : > { %v1209_v0 = vpop.permute.xlu1 %1208 }
 0x36b   : > { %v1228_v5 = vsel %vm1226_vm9, %v1224_v3, %v1209_v0 }
 0x36c   : > { %1326 = vmatmul.mubr.f32.gmra.mrb[2].mxu0 %v1228_v5  ;;  %v1555_v5 = vmul.f32 %v1776_v55, %v2300_v61 }
 0x36d   : > { %1768 = vmatprep.mubr.msk.f32.mxu0 %vm907_vm11, %v1218_v50 }
 0x36e   : > { %v1211_v8 = vpop.permute.xlu1 %1210 }
 0x36f   : > { %v1229_v9 = vsel %vm1226_vm9, %v1225_v7, %v1211_v8 }
 0x370   : > { %1331 = vmatmul.mubr.f32.gmra.mrb[4].mxu0 %v1229_v9 }
 0x371   : > { %1902 = vmatprep.mubr.msk.f32.mxu0 %vm2020_vm0, %v2021_v4 }
 0x374   : > { %1903 = vmatmul.mubr.msk.f32.vlgmr.msra.gmra.mrb[6].mxu0 %vm680_vm4, %v790_v44  ;;  %v1415_v44 = vld [vmem:[%s2582_s13 + $0x8] sm:$0xff] }
 0x375   : > { %1905 = vmatprep.mubr.msk.f32.mxu0 %vm2020_vm0, %v2021_v4 }
 0x378   : > { %1906 = vmatmul.mubr.msk.f32.gmra.mrb[8].mxu0 %vm680_vm4, %v791_v51  ;;  %v1960_v51 = vpack.c.bf16 %v1415_v44, %v1414_v40 }
 0x379   : > { %1908 = vmatprep.mubr.msk.f32.mxu0 %vm2020_vm0, %v2021_v4 }
 0x37a   : > { %1961 = vmatpush3.bf16.msra.mxu1 %v1960_v51 }
 0x37b   : > { %1962 = vmatprep.subr.bf16.mxu1 %v2019_v1 }
 0x37c   : > { %1909 = vmatmul.mubr.msk.f32.gmra.mrb[10].mxu0 %vm680_vm4, %v792_v58  ;;  %v1418_v58 = vld [vmem:[%s2582_s13 + $0x20] sm:$0xff] }
 0x37d   : > { %v1966_v12 = vpack.c.bf16 %v1419_v11, %v1418_v58 }
 0x37e   : > { %1964 = vmatpush3.bf16.msra.mxu1 %v1963_v56 }
 0x37f   : > { %1965 = vmatprep.subr.bf16.mxu1 %v2019_v1 }
 0x382   : > { %1967 = vmatpush3.bf16.msra.mxu1 %v1966_v12 }
 0x383   : > { %1968 = vmatprep.subr.bf16.mxu1 %v2019_v1 }
 0x386   : > { %1970 = vmatpush3.bf16.msra.mxu1 %v1969_v15 }
 0x387   : > { %1971 = vmatprep.subr.bf16.mxu1 %v2019_v1 }
 0x38a   : > { %1973 = vmatpush3.bf16.msra.mxu1 %v1972_v18 }
 0x38b   : > { %1974 = vmatprep.subr.bf16.mxu1 %v2019_v1 }
 0x38e   : > { %1976 = vmatpush3.bf16.msra.mxu1 %v1975_v21  ;;  %v1774_v21 = vld [vmem:[%s2583_s14] ss:$0 sm:$0xff] }
 0x43a   : > { %v1322_v23 = vpop.f32.mrb[0].mxu0 }
 0x43b   : > { %v1343_v25 = vmul.f32 %v1769_v22, %v1322_v23  ;;  %v1324_v26 = vpop.f32.mrb[1].mxu0 }
 0x43d   : > { %v1353_v27 = vadd.f32 %v1770_v24, %v1343_v25 }
 0x43f   : > { %vm1356_vm7 = vcmp.ge.f32.partialorder %v1353_v27, 0.0  ;;  %v1359_v30 = vmul.f32 0.2, %v1353_v27  ;;  %v1327_v28 = vpop.f32.mrb[2].mxu0 }
 0x440   : > { %v1344_v32 = vmul.f32 %v1769_v22, %v1327_v28  ;;  %v1329_v34 = vpop.f32.mrb[3].mxu0 }
 0x441   : > { %v1362_v35 = vsel %vm1356_vm7, %v1353_v27, %v1359_v30  ;;  %v1781_v27 = vld [vmem:[%s2588_s19] ss:$0 sm:$0xff] }
 0x442   : > { %v1368_v1 = vrot.slane %v1362_v35, 7  ;;  %v1354_v36 = vadd.f32 %v1770_v24, %v1344_v32 }
 0x443   : > { %v1332_v37 = vpop.f32.mrb[4].mxu0 }
 0x444   : > { %vm1357_vm8 = vcmp.ge.f32.partialorder %v1354_v36, 0.0  ;;  %v1360_v33 = vmul.f32 0.2, %v1354_v36  ;;  %v1345_v31 = vmul.f32 %v1769_v22, %v1332_v37  ;;  %v1334_v38 = vpop.f32.mrb[5].mxu0  ;;  %v1376_v42 = vsel %vm648_vm1, 0.0, %v1368_v1 }
 0x445   : > { %v1394_v50 = vrot.slane %v1376_v42, 2  ;;  %v1380_v53 = vrot.slane %v1376_v42, 1  ;;  %v1780_v22 = vld [vmem:[%s2587_s18] ss:$0 sm:$0xff] }
 0x446   : > { %v1363_v39 = vsel %vm1357_vm8, %v1354_v36, %v1360_v33  ;;  %v1355_v41 = vadd.f32 %v1770_v24, %v1345_v31  ;;  %v1554_v24 = vmul.f32 %v1776_v55, %v2306_v2 }
 0x447   : > { %v1369_v43 = vrot.slane %v1363_v39, 7  ;;  %v1628_v29 = vpop.f32.mrb[6].mxu0 }
 0x448   : > { %vm1358_vm12 = vcmp.ge.f32.partialorder %v1355_v41, 0.0  ;;  %v1361_v45 = vmul.f32 0.2, %v1355_v41  ;;  %v1904_v46 = vpop.f32.mrb[7].mxu0  ;;  %v1629_v20 = vadd.f32 %v1628_v29, %v1553_v19 }
 0x449   : > { %v1370_v47 = vsel %vm648_vm1, %v1368_v1, %v1369_v43 }
 0x44a   : > { %v1364_v48 = vsel %vm1358_vm12, %v1355_v41, %v1361_v45  ;;  %v1395_v52 = vrot.slane %v1370_v47, 2  ;;  %v1381_v54 = vrot.slane %v1370_v47, 1  ;;  %v1649_v63 = vmul.f32 %v1780_v22, %v1629_v20 }
 0x44b   : > { %v1371_v59 = vrot.slane %v1364_v48, 7  ;;  %v1633_v57 = vpop.f32.mrb[8].mxu0 }
 0x44c   : > { %v1907_v60 = vpop.f32.mrb[9].mxu0  ;;  %v1396_v62 = vsel %vm859_vm6, %v1394_v50, %v1395_v52  ;;  %v1382_v0 = vsel %vm659_vm2, %v1380_v53, %v1381_v54  ;;  %v1634_v30 = vadd.f32 %v1633_v57, %v1554_v24  ;;  %v1659_v35 = vadd.f32 %v1781_v27, %v1649_v63 }
 0x44d   : > { %1399 = vrot.lane.b32.xlu1 %v1396_v62, %s2025_s24  ;;  %1385 = vrot.lane.b32.xlu0 %v1382_v0, %s2605_s2  ;;  %v1372_v3 = vsel %vm648_vm1, %v1369_v43, %v1371_v59 }
 0x44e   : > { %v1377_v6 = vsel %vm819_vm5, %v1372_v3, 0.0  ;;  %v1650_v37 = vmul.f32 %v1780_v22, %v1634_v30 }
 0x44f   : > { %v1638_v7 = vpop.f32.mrb[10].mxu0  ;;  %v1397_v8 = vrot.slane %v1377_v6, 2  ;;  %v1383_v9 = vrot.slane %v1377_v6, 1 }
 0x450   : > { %v1639_v40 = vadd.f32 %v1638_v7, %v1555_v5  ;;  %v1910_v44 = vpop.f32.mrb[11].mxu0 }
 0x451   : > { %v1398_v49 = vsel %vm859_vm6, %v1395_v52, %v1397_v8  ;;  %v1384_v51 = vsel %vm659_vm2, %v1381_v54, %v1383_v9 }
 0x452   : > { %1401 = vrot.lane.b32.xlu1 %v1398_v49, %s2025_s24  ;;  %1387 = vrot.lane.b32.xlu0 %v1384_v51, %s2605_s2  ;;  %v1651_v45 = vmul.f32 %v1780_v22, %v1639_v40 }
 0x454   : > { %v1661_v54 = vadd.f32 %v1781_v27, %v1651_v45 }
 0x456   : > { %1403 = vrot.lane.b32.xlu1 %v1397_v8, %s2025_s24  ;;  %1389 = vrot.lane.b32.xlu0 %v1383_v9, %s2605_s2 }
 0x4bf   : > { %v1400_v61 = vpop.permute.xlu1 %1399  ;;  %v1386_v10 = vpop.permute.xlu0 %1385 }
 0x4c0   : > { %v1408_v56 = vsel %vm907_vm11, %v1376_v42, %v1386_v10  ;;  %v1660_v42 = vadd.f32 %v1781_v27, %v1650_v37 }
 0x4c1   : > { %v1411_v58 = vsel %vm915_vm13, %v1408_v56, %v1400_v61 }
 0x4c2   : > { %1890 = vmatmul.mubr.msk.f32.vlgmr.msra.gmra.mrb[12].mxu1 %vm1226_vm9, %v1411_v58 }
 0x4c3   : > { %1892 = vmatprep.mubr.msk.f32.mxu1 %vm2020_vm0, %v2021_v4 }
 0x4c4   : > { %v1402_v11 = vpop.permute.xlu1 %1401  ;;  %v1388_v12 = vpop.permute.xlu0 %1387 }
 0x4c5   : > { %v1409_v13 = vsel %vm907_vm11, %v1370_v47, %v1388_v12 }
 0x4c6   : > { %v1412_v14 = vsel %vm915_vm13, %v1409_v13, %v1402_v11 }
 0x4c7   : > { %1893 = vmatmul.mubr.msk.f32.gmra.mrb[14].mxu1 %vm1226_vm9, %v1412_v14 }
 0x4c8   : > { %v1404_v15 = vpop.permute.xlu1 %1403  ;;  %v1390_v16 = vpop.permute.xlu0 %1389  ;;  %1895 = vmatprep.mubr.msk.f32.mxu1 %vm2020_vm0, %v2021_v4  ;;  %v1775_v4 = vld [vmem:[%s2584_s15] ss:$0 sm:$0xff] }
 0x4c9   : > { %v1410_v17 = vsel %vm907_vm11, %v1377_v6, %v1390_v16 }
 0x4ca   : > { %v1413_v18 = vsel %vm915_vm13, %v1410_v17, %v1404_v15  ;;  %vm1676_vm13 = vcmask 122880  }
 0x4cb   : > { %1896 = vmatmul.mubr.msk.f32.gmra.mrb[16].mxu1 %vm1226_vm9, %v1413_v18 }
 0x595   : > { %v1501_v23 = vpop.f32.mrb[12].mxu1 }
 0x596   : > { %v1522_v25 = vmul.f32 %v1774_v21, %v1501_v23  ;;  %v1891_v26 = vpop.f32.mrb[13].mxu1 }
 0x598   : > { %v1532_v28 = vadd.f32 %v1775_v4, %v1522_v25 }
 0x59a   : > { %vm1535_vm0 = vcmp.ge.f32.partialorder %v1532_v28, 0.0  ;;  %v1538_v32 = vmul.f32 0.2, %v1532_v28  ;;  %v1506_v34 = vpop.f32.mrb[14].mxu1 }
 0x59b   : > { %v1523_v1 = vmul.f32 %v1774_v21, %v1506_v34  ;;  %v1894_v36 = vpop.f32.mrb[15].mxu1 }
 0x59c   : > { %v1541_v33 = vsel %vm1535_vm0, %v1532_v28, %v1538_v32 }
 0x59d   : > { %v1662_v31 = vadd.f32 %v1659_v35, %v1541_v33  ;;  %v1533_v2 = vadd.f32 %v1775_v4, %v1523_v1 }
 0x59e   : > { %v1511_v38 = vpop.f32.mrb[16].mxu1 }
 0x59f   : > { %vm1665_vm1 = vcmp.ge.f32.partialorder %v1662_v31, 0.0  ;;  %v1668_v39 = vmul.f32 0.01, %v1662_v31  ;;  %vm1536_vm2 = vcmp.ge.f32.partialorder %v1533_v2, 0.0  ;;  %v1539_v41 = vmul.f32 0.2, %v1533_v2 }
 0x5a0   : > { %v1524_v43 = vmul.f32 %v1774_v21, %v1511_v38  ;;  %v1897_v29 = vpop.f32.mrb[17].mxu1 }
 0x5a1   : > { %v1671_v46 = vsel %vm1665_vm1, %v1662_v31, %v1668_v39  ;;  %v1542_v47 = vsel %vm1536_vm2, %v1533_v2, %v1539_v41 }
 0x5a2   : > { %1674 = vst.msk [vmem:[%s643_s26] sm:$0xff] %vm680_vm4, %v1671_v46  ;;  %v1663_v50 = vadd.f32 %v1660_v42, %v1542_v47  ;;  %v1534_v48 = vadd.f32 %v1775_v4, %v1524_v43 }
 0x5a4   : > { %vm1666_vm5 = vcmp.ge.f32.partialorder %v1663_v50, 0.0  ;;  %v1669_v52 = vmul.f32 0.01, %v1663_v50  ;;  %vm1537_vm6 = vcmp.ge.f32.partialorder %v1534_v48, 0.0  ;;  %v1540_v53 = vmul.f32 0.2, %v1534_v48 }
 0x5a6   : > { %v1672_v55 = vsel %vm1666_vm5, %v1663_v50, %v1669_v52  ;;  %v1543_v59 = vsel %vm1537_vm6, %v1534_v48, %v1540_v53 }
 0x5a7   : > { %1675 = vst.msk [vmem:[%s643_s26 + $0x8] sm:$0xff] %vm680_vm4, %v1672_v55  ;;  %v1664_v57 = vadd.f32 %v1661_v54, %v1543_v59 }
 0x5a9   : > { %vm1667_vm11 = vcmp.ge.f32.partialorder %v1664_v57, 0.0  ;;  %v1670_v60 = vmul.f32 0.01, %v1664_v57 }
 0x5ab   : > { %v1673_v62 = vsel %vm1667_vm11, %v1664_v57, %v1670_v60 }
 0x5ac   : > { %1677 = vst.msk [vmem:[%s643_s26 + $0x10] sm:$0x1] %vm1676_vm13, %v1673_v62 }
 0x5ad PF: > { %s30_s1 = sadd.s32 1, %s2017_s1  }
 0x5ae   : > { %p27_p4 = scmp.ge.s32.totalorder %s30_s1, 4  }
 0x5b0   :  { %29 = sbr.rel (!%p27_p4) target bundleno = 6 (0x6), region = 133 }

</bundles_post_ra>
